<compile_context>
chip_gen: v5e
topology: v5e:2x2
jax: 0.10.0
libtpu: 0.0.40
codegen_flags: <defaults>
</compile_context>

<pallas_src>
import jax
import jax.numpy as jnp
from jax.experimental import pallas as pl
from jax.experimental.pallas import tpu as pltpu

LANE = 128


# ----------------------------------------------------------------------------
# Kernels
# ----------------------------------------------------------------------------
def gcn_layer1_kernel(counts_ref, cols_ref, a_ref, xw_ref, b1_ref, w2_ref,
                      hw2_ref, acc_ref):
    """Row tile i, nonzero-block step k:
         acc[i] += A[i, cols[i,k]] @ XW1[cols[i,k]]        (only if k < count[i])
       finalize: HW2[i] = relu(acc[i] + b1) @ W2
    a_ref: (TM, TK) bf16   xw_ref: (TK, HPAD) bf16
    b1_ref: (1, HPAD) f32  w2_ref: (HPAD, CPAD) bf16
    hw2_ref: (TM, CPAD) bf16 out   acc_ref: (TM, HPAD) f32 scratch
    """
    del cols_ref  # only used by the index_maps
    i = pl.program_id(0)
    k = pl.program_id(1)

    @pl.when(k == 0)
    def _():
        acc_ref[...] = jnp.zeros_like(acc_ref)

    @pl.when(k < counts_ref[i])
    def _():
        acc_ref[...] += jnp.dot(a_ref[...], xw_ref[...],
                                preferred_element_type=jnp.float32)

    @pl.when(k == pl.num_programs(1) - 1)
    def _():
        h = jnp.maximum(acc_ref[...] + b1_ref[...], 0.0)   # conv1 bias + relu (f32)
        hw2 = jnp.dot(h.astype(jnp.bfloat16), w2_ref[...],
                      preferred_element_type=jnp.float32)
        hw2_ref[...] = hw2.astype(hw2_ref.dtype)


def gcn_layer2_kernel(counts_ref, cols_ref, a_ref, hw2_ref, b2_ref, o_ref,
                      acc_ref):
    """Row tile i, nonzero-block step k:
         acc[i] += A[i, cols[i,k]] @ HW2[cols[i,k]]        (only if k < count[i])
       finalize: out[i] = log_softmax(acc[i] + b2_pad)  (padded class lanes ~ -1e30)
    """
    del cols_ref
    i = pl.program_id(0)
    k = pl.program_id(1)

    @pl.when(k == 0)
    def _():
        acc_ref[...] = jnp.zeros_like(acc_ref)

    @pl.when(k < counts_ref[i])
    def _():
        acc_ref[...] += jnp.dot(a_ref[...], hw2_ref[...],
                                preferred_element_type=jnp.float32)

    @pl.when(k == pl.num_programs(1) - 1)
    def _():
        z = acc_ref[...] + b2_ref[...]           # padded lanes -> ~-1e30
        m = jnp.max(z, axis=1, keepdims=True)    # real classes dominate the max
        s = z - m
        lse = jnp.log(jnp.sum(jnp.exp(s), axis=1, keepdims=True))
        o_ref[...] = s - lse                     # lane-dense [TM, CPAD] store


# ----------------------------------------------------------------------------
# Preparation (done once, reused across forward calls)
# ----------------------------------------------------------------------------
def _round_up(n, m):
    return ((n + m - 1) // m) * m


def _choose_tiles(n, tm_target=256, tk_target=1024):
    """Power-of-two multiples of 128 for TM/TK; keep >= 2 row tiles (v7x 2 TCs)."""
    n128 = _round_up(n, LANE)
    tk = LANE
    while tk * 2 <= min(tk_target, n128):
        tk *= 2
    tm = LANE
    while tm * 2 <= tm_target and _round_up(n, max(tm * 2, tk)) // (tm * 2) >= 2:
        tm *= 2
    npad = _round_up(n, max(tm, tk))
    return tm, tk, npad


def _build_block_schedule(a_p, tm, tk):
    """Per row tile: count of nonzero (TM,TK) A blocks + their column-block ids.

    Padding entries repeat the last valid block id so the auto-pipeline dedups
    their DMA; the kernel gates accumulation with `k < count`, so correctness
    never depends on the dedup.
    """
    npad = a_p.shape[0]
    nrb, nkb = npad // tm, npad // tk
    blk = jnp.any(a_p.reshape(nrb, tm, nkb, tk) != 0, axis=(1, 3))        # [nrb, nkb]
    counts = jnp.sum(blk, axis=1).astype(jnp.int32)                        # [nrb]
    col = jnp.arange(nkb, dtype=jnp.int32)[None, :]
    order = jnp.argsort(jnp.where(blk, col, col + nkb), axis=1).astype(jnp.int32)
    last = jnp.take_along_axis(order, jnp.maximum(counts - 1, 0)[:, None], axis=1)
    cols = jnp.where(col < counts[:, None], order, last).astype(jnp.int32)
    max_k = max(int(jnp.max(counts)), 1)
    return counts, cols.reshape(-1), max_k       # cols flattened (SMEM-friendly 1D)


def prepare_adjacency(a_hat, *, tm_target=256, tk_target=1024):
    """Pad + cast A_hat to bf16 and build the block-sparse schedule (once)."""
    n = a_hat.shape[0]
    tm, tk, npad = _choose_tiles(n, tm_target, tk_target)
    a_p = jnp.zeros((npad, npad), jnp.bfloat16).at[:n, :n].set(
        a_hat.astype(jnp.bfloat16))
    counts, cols, max_k = _build_block_schedule(a_p, tm, tk)
    return dict(a_p=a_p, counts=counts, cols=cols, max_k=max_k,
                tm=tm, tk=tk, npad=npad, n=n)


# ----------------------------------------------------------------------------
# Forward
# ----------------------------------------------------------------------------
def gcn_forward(prep, x, w1, b1, w2, b2):
    """Full GCN forward using a prepared (padded, block-scheduled) adjacency."""
    n, f_in = x.shape
    assert n == prep["n"]
    hidden = w1.shape[1]
    n_cls = w2.shape[1]

    npad, tm, tk = prep["npad"], prep["tm"], prep["tk"]
    nkb = npad // tk
    hpad = _round_up(hidden, LANE)
    cpad = _round_up(n_cls, LANE)

    # Hoisted feature transform: XW1 = X @ W1 once (plain XLA), then pad.
    xw1 = jnp.dot(x.astype(jnp.bfloat16), w1.astype(jnp.bfloat16),
                  preferred_element_type=jnp.float32)
    xw1_p = jnp.zeros((npad, hpad), jnp.bfloat16).at[:n, :hidden].set(
        xw1.astype(jnp.bfloat16))

    b1_p = jnp.zeros((1, hpad), jnp.float32).at[:, :hidden].set(
        jnp.reshape(b1, (1, hidden)).astype(jnp.float32))
    w2_p = jnp.zeros((hpad, cpad), jnp.bfloat16).at[:hidden, :n_cls].set(
        w2.astype(jnp.bfloat16))
    b2_p = jnp.full((1, cpad), -1e30, jnp.float32).at[:, :n_cls].set(
        jnp.reshape(b2, (1, n_cls)).astype(jnp.float32))

    grid = (npad // tm, prep["max_k"])
    cparams = pltpu.CompilerParams(
        dimension_semantics=("parallel", "arbitrary"),
        # Per-stage VMEM is ~2 MiB at the largest default tiles; 32 MiB is a
        # safe scoped limit on v5e/v6e/v7x (raise together with tk_target).
        vmem_limit_bytes=32 * 1024 * 1024,
    )

    # -------- stage 1: HW2 = relu(A @ XW1 + b1) @ W2 --------
    hw2 = pl.pallas_call(
        gcn_layer1_kernel,
        out_shape=jax.ShapeDtypeStruct((npad, cpad), jnp.bfloat16),
        grid_spec=pltpu.PrefetchScalarGridSpec(
            num_scalar_prefetch=2,
            grid=grid,
            in_specs=[
                pl.BlockSpec((tm, tk),
                             lambda i, k, cnt, cols: (i, cols[i * nkb + k])),   # A
                pl.BlockSpec((tk, hpad),
                             lambda i, k, cnt, cols: (cols[i * nkb + k], 0)),   # XW1
                pl.BlockSpec((1, hpad), lambda i, k, cnt, cols: (0, 0)),        # b1
                pl.BlockSpec((hpad, cpad), lambda i, k, cnt, cols: (0, 0)),     # W2
            ],
            out_specs=pl.BlockSpec((tm, cpad), lambda i, k, cnt, cols: (i, 0)),
            scratch_shapes=[pltpu.VMEM((tm, hpad), jnp.float32)],
        ),
        compiler_params=cparams,
    )(prep["counts"], prep["cols"], prep["a_p"], xw1_p, b1_p, w2_p)

    # -------- stage 2: out = log_softmax(A @ HW2 + b2) --------
    out_pad = pl.pallas_call(
        gcn_layer2_kernel,
        out_shape=jax.ShapeDtypeStruct((npad, cpad), jnp.float32),
        grid_spec=pltpu.PrefetchScalarGridSpec(
            num_scalar_prefetch=2,
            grid=grid,
            in_specs=[
                pl.BlockSpec((tm, tk),
                             lambda i, k, cnt, cols: (i, cols[i * nkb + k])),   # A
                pl.BlockSpec((tk, cpad),
                             lambda i, k, cnt, cols: (cols[i * nkb + k], 0)),   # HW2
                pl.BlockSpec((1, cpad), lambda i, k, cnt, cols: (0, 0)),        # b2
            ],
            out_specs=pl.BlockSpec((tm, cpad), lambda i, k, cnt, cols: (i, 0)),
            scratch_shapes=[pltpu.VMEM((tm, cpad), jnp.float32)],
        ),
        compiler_params=cparams,
    )(prep["counts"], prep["cols"], prep["a_p"], hw2, b2_p)

    return out_pad[:n, :n_cls]


# ----------------------------------------------------------------------------
# Glue: dense normalized adjacency from edge_index (plain JAX, not in-kernel)
# ----------------------------------------------------------------------------
def build_normalized_adjacency(edge_index, num_nodes):
    """D^{-1/2} (A + I) D^{-1/2} from edge_index [2, E] (src, dst).

    Matches torch_geometric GCNConv's gcn_norm (add_self_loops=True) for an
    edge_index without pre-existing self loops / duplicate edges.
    """
    src, dst = edge_index[0], edge_index[1]
    a = jnp.zeros((num_nodes, num_nodes), jnp.float32)
    a = a.at[dst, src].add(1.0)                       # message j -> i
    a = a + jnp.eye(num_nodes, dtype=jnp.float32)     # self loops
    deg = jnp.sum(a, axis=1)
    dinv = jnp.where(deg > 0, 1.0 / jnp.sqrt(deg), 0.0)
    return dinv[:, None] * a * dinv[None, :]


if __name__ == "__main__":
    # Small synthetic "dataset": 300 nodes (pads to 512 -> 2 row tiles x 2
    # column blocks, exercising the accumulator + block-sparse schedule),
    # 8 features, 16 hidden, 4 classes.
    N, F_IN, HIDDEN, NUM_CLASSES = 300, 8, 16, 4

    key = jax.random.PRNGKey(0)
    k_x, k_w1, k_b1, k_w2, k_b2 = jax.random.split(key, 5)

    # Node features.
    x = jax.random.normal(k_x, (N, F_IN), jnp.float32)

    # Bidirectional ring graph as edge_index [2, E].
    src = jnp.arange(N, dtype=jnp.int32)
    dst = (src + 1) % N
    edge_index = jnp.concatenate(
        [jnp.stack([src, dst], axis=0), jnp.stack([dst, src], axis=0)], axis=1
    )
    a_hat = build_normalized_adjacency(edge_index, N)

    # Deterministic parameters (GCNConv(F_IN,16) and GCNConv(16,num_classes)).
    w1 = jax.random.normal(k_w1, (F_IN, HIDDEN), jnp.float32) * 0.2
    b1 = jax.random.normal(k_b1, (1, HIDDEN), jnp.float32) * 0.1
    w2 = jax.random.normal(k_w2, (HIDDEN, NUM_CLASSES), jnp.float32) * 0.2
    b2 = jax.random.normal(k_b2, (1, NUM_CLASSES), jnp.float32) * 0.1

    # Prepare A_hat (pad + bf16 cast + block-sparse schedule) once; reuse per call.
    prep = prepare_adjacency(a_hat)

    out = gcn_forward(prep, x, w1, b1, w2, b2)
    out = jax.block_until_ready(out)

    # Plain-JAX f32 reference (kernel uses bf16 MXU inputs + f32 accumulation).
    h_ref = jnp.maximum(a_hat @ (x @ w1) + b1, 0.0)
    z_ref = a_hat @ (h_ref @ w2) + b2
    ref = jax.nn.log_softmax(z_ref, axis=1)

    assert out.shape == (N, NUM_CLASSES)
    assert jnp.allclose(out, ref, atol=2e-2, rtol=2e-2), float(
        jnp.max(jnp.abs(out - ref))
    )

    print("KERNEL_OK")
</pallas_src>

<mosaic_0001>
module attributes {stable_mosaic.version = 11 : i64} {
  func.func @gcn_layer1_kernel(%arg0: i32, %arg1: i32, %arg2: memref<2xi32, #tpu.memory_space<smem>>, %arg3: memref<4xi32, #tpu.memory_space<smem>>, %arg4: memref<256x256xbf16, #tpu.memory_space<vmem>>, %arg5: memref<256x128xbf16, #tpu.memory_space<vmem>>, %arg6: memref<1x128xf32, #tpu.memory_space<vmem>>, %arg7: memref<128x128xbf16, #tpu.memory_space<vmem>>, %arg8: memref<256x128xbf16, #tpu.memory_space<vmem>>, %arg9: memref<256x128xf32, #tpu.memory_space<vmem>>) attributes {dimension_semantics = [#tpu.dimension_semantics<parallel>, #tpu.dimension_semantics<arbitrary>], iteration_bounds = array<i64: 2, 2>, scalar_prefetch = 2 : i64, scratch_operands = 1 : i64, tpu.core_type = #tpu.core_type<tc>, window_params = [{transform_indices = @transform_0, window_bounds = array<i64: 256, 256>}, {transform_indices = @transform_1, window_bounds = array<i64: 256, 128>}, {pipeline_mode = #tpu.pipeline_mode<synchronous>, transform_indices = @transform_2, window_bounds = array<i64: 1, 128>}, {pipeline_mode = #tpu.pipeline_mode<synchronous>, transform_indices = @transform_3, window_bounds = array<i64: 128, 128>}, {transform_indices = @transform_4, window_bounds = array<i64: 256, 128>}]} {
    %c0_i32 = arith.constant 0 : i32
    %0 = arith.cmpi eq, %arg1, %c0_i32 : i32
    %1 = arith.extui %0 : i1 to i32
    %c0_i32_0 = arith.constant 0 : i32
    %2 = arith.cmpi ne, %1, %c0_i32_0 : i32
    scf.if %2 {
      %cst = arith.constant 0.000000e+00 : f32
      %11 = vector.broadcast %cst : f32 to vector<256x128xf32>
      %c0 = arith.constant 0 : index
      %c0_3 = arith.constant 0 : index
      %12 = vector.load %arg9[%c0, %c0_3] : memref<256x128xf32, #tpu.memory_space<vmem>>, vector<256x128xf32>
      tpu.vector_store %arg9[%c0, %c0_3], %11 {strides = array<i32>} : memref<256x128xf32, #tpu.memory_space<vmem>>, vector<256x128xf32>,
    } else {
    }
    %3 = arith.index_cast %arg0 : i32 to index
    %4 = memref.load %arg2[%3] : memref<2xi32, #tpu.memory_space<smem>>
    %5 = arith.cmpi slt, %arg1, %4 : i32
    %6 = arith.extui %5 : i1 to i32
    %c0_i32_1 = arith.constant 0 : i32
    %7 = arith.cmpi ne, %6, %c0_i32_1 : i32
    scf.if %7 {
      %c0 = arith.constant 0 : index
      %c0_3 = arith.constant 0 : index
      %11 = vector.load %arg9[%c0, %c0_3] : memref<256x128xf32, #tpu.memory_space<vmem>>, vector<256x128xf32>
      %c0_4 = arith.constant 0 : index
      %c0_5 = arith.constant 0 : index
      %12 = vector.load %arg4[%c0_4, %c0_5] : memref<256x256xbf16, #tpu.memory_space<vmem>>, vector<256x256xbf16>
      %c0_6 = arith.constant 0 : index
      %c0_7 = arith.constant 0 : index
      %13 = vector.load %arg5[%c0_6, %c0_7] : memref<256x128xbf16, #tpu.memory_space<vmem>>, vector<256x128xbf16>
      %cst = arith.constant dense<0.000000e+00> : vector<256x128xf32>
      %14 = tpu.matmul %12, %13, %cst {dimension_numbers = #tpu.dot_dimension_numbers<[1], [0], [0], [1], [0, 0, 1, 1], [], []>} : vector<256x256xbf16>, vector<256x128xbf16>, vector<256x128xf32> -> vector<256x128xf32>
      %15 = arith.addf %11, %14 : vector<256x128xf32>
      %c0_8 = arith.constant 0 : index
      %c0_9 = arith.constant 0 : index
      %16 = vector.load %arg9[%c0_8, %c0_9] : memref<256x128xf32, #tpu.memory_space<vmem>>, vector<256x128xf32>
      tpu.vector_store %arg9[%c0_8, %c0_9], %15 {strides = array<i32>} : memref<256x128xf32, #tpu.memory_space<vmem>>, vector<256x128xf32>,
    } else {
    }
    %c1_i32 = arith.constant 1 : i32
    %8 = arith.cmpi eq, %arg1, %c1_i32 : i32
    %9 = arith.extui %8 : i1 to i32
    %c0_i32_2 = arith.constant 0 : i32
    %10 = arith.cmpi ne, %9, %c0_i32_2 : i32
    scf.if %10 {
      %c0 = arith.constant 0 : index
      %c0_3 = arith.constant 0 : index
      %11 = vector.load %arg9[%c0, %c0_3] : memref<256x128xf32, #tpu.memory_space<vmem>>, vector<256x128xf32>
      %c0_4 = arith.constant 0 : index
      %c0_5 = arith.constant 0 : index
      %12 = vector.load %arg6[%c0_4, %c0_5] : memref<1x128xf32, #tpu.memory_space<vmem>>, vector<1x128xf32>
      %13 = vector.broadcast %12 : vector<1x128xf32> to vector<256x128xf32>
      %14 = arith.addf %11, %13 : vector<256x128xf32>
      %cst = arith.constant 0.000000e+00 : f32
      %15 = vector.broadcast %cst : f32 to vector<256x128xf32>
      %16 = arith.maximumf %14, %15 : vector<256x128xf32>
      %17 = arith.truncf %16 : vector<256x128xf32> to vector<256x128xbf16>
      %c0_6 = arith.constant 0 : index
      %c0_7 = arith.constant 0 : index
      %18 = vector.load %arg7[%c0_6, %c0_7] : memref<128x128xbf16, #tpu.memory_space<vmem>>, vector<128x128xbf16>
      %cst_8 = arith.constant dense<0.000000e+00> : vector<256x128xf32>
      %19 = tpu.matmul %17, %18, %cst_8 {dimension_numbers = #tpu.dot_dimension_numbers<[1], [0], [0], [1], [0, 0, 1, 1], [], []>} : vector<256x128xbf16>, vector<128x128xbf16>, vector<256x128xf32> -> vector<256x128xf32>
      %20 = arith.truncf %19 : vector<256x128xf32> to vector<256x128xbf16>
      %c0_9 = arith.constant 0 : index
      %c0_10 = arith.constant 0 : index
      %21 = vector.load %arg8[%c0_9, %c0_10] : memref<256x128xbf16, #tpu.memory_space<vmem>>, vector<256x128xbf16>
      tpu.vector_store %arg8[%c0_9, %c0_10], %20 {strides = array<i32>} : memref<256x128xbf16, #tpu.memory_space<vmem>>, vector<256x128xbf16>,
    } else {
    }
    return
  }
  func.func @transform_0(%arg0: i32, %arg1: i32, %arg2: memref<2xi32, #tpu.memory_space<smem>>, %arg3: memref<4xi32, #tpu.memory_space<smem>>) -> (i32, i32) {
    %c2_i32 = arith.constant 2 : i32
    %0 = arith.muli %arg0, %c2_i32 : i32
    %1 = arith.addi %0, %arg1 : i32
    %2 = arith.index_cast %1 : i32 to index
    %3 = memref.load %arg3[%2] : memref<4xi32, #tpu.memory_space<smem>>
    %c0_i32 = arith.constant 0 : i32
    return %arg0, %3 : i32, i32
  }
  func.func @transform_1(%arg0: i32, %arg1: i32, %arg2: memref<2xi32, #tpu.memory_space<smem>>, %arg3: memref<4xi32, #tpu.memory_space<smem>>) -> (i32, i32) {
    %c2_i32 = arith.constant 2 : i32
    %0 = arith.muli %arg0, %c2_i32 : i32
    %1 = arith.addi %0, %arg1 : i32
    %2 = arith.index_cast %1 : i32 to index
    %3 = memref.load %arg3[%2] : memref<4xi32, #tpu.memory_space<smem>>
    %c0_i32 = arith.constant 0 : i32
    %c0_i32_0 = arith.constant 0 : i32
    return %3, %c0_i32 : i32, i32
  }
  func.func @transform_2(%arg0: i32, %arg1: i32, %arg2: memref<2xi32, #tpu.memory_space<smem>>, %arg3: memref<4xi32, #tpu.memory_space<smem>>) -> (i32, i32) {
    %c0_i32 = arith.constant 0 : i32
    %c0_i32_0 = arith.constant 0 : i32
    %c0_i32_1 = arith.constant 0 : i32
    return %c0_i32, %c0_i32_0 : i32, i32
  }
  func.func @transform_3(%arg0: i32, %arg1: i32, %arg2: memref<2xi32, #tpu.memory_space<smem>>, %arg3: memref<4xi32, #tpu.memory_space<smem>>) -> (i32, i32) {
    %c0_i32 = arith.constant 0 : i32
    %c0_i32_0 = arith.constant 0 : i32
    %c0_i32_1 = arith.constant 0 : i32
    return %c0_i32, %c0_i32_0 : i32, i32
  }
  func.func @transform_4(%arg0: i32, %arg1: i32, %arg2: memref<2xi32, #tpu.memory_space<smem>>, %arg3: memref<4xi32, #tpu.memory_space<smem>>) -> (i32, i32) {
    %c0_i32 = arith.constant 0 : i32
    %c0_i32_0 = arith.constant 0 : i32
    return %arg0, %c0_i32 : i32, i32
  }
}

</mosaic_0001>

<bundles_post_ra>
// kernel: tpu_custom_call.1
= control target key start
LH: loop header
LB: loop body
LE: loop exit
PB: predicated region body
PF: predicated region fallthrough
CT: control target
= control target key end

     0   :  { %s2326_s27 = smov [#allocation4]   ;;  %s2327_s28 = smov [#allocation5]   ;;  %s2847_s0 = inlined_call_operand.hbm [shape: s32[2], index: 0, kind: input, shape index: {}]   ;;  %s2848_s2 = inlined_call_operand.hbm [shape: bf16[512,512], index: 2, kind: input, shape index: {}]   ;;  %s2849_s3 = inlined_call_operand.hbm [shape: bf16[512,128], index: 3, kind: input, shape index: {}]   ;;  %s2850_s4 = inlined_call_operand.vmem [shape: f32[1,128], index: 4, kind: input, shape index: {}]   ;;  %s2851_s5 = inlined_call_operand.hbm [shape: bf16[128,128], index: 5, kind: input, shape index: {}]   ;;  %s2852_s6 = inlined_call_operand.hbm [shape: bf16[512,128], index: 6, kind: output, shape index: {}]   ;;  %s2853_s1 = inlined_call_operand.hbm [shape: s32[4], index: 1, kind: input, shape index: {}]  }
   0x1   :  { %2871 = sst [smem:[#allocation35_spill]] %s2850_s4  ;;  %s12_s23 = sshll.u32 %s2847_s0, 4  ;;  %s13_s23 = int_to_ptr.hbm [resolvable:$true] %s12_s23 }
   0x2   :  { %2872 = sst [smem:[#allocation36_spill]] %s2851_s5  ;;  %s17_s26 = sshll.u32 %s2853_s1, 4  ;;  %s18_s26 = int_to_ptr.hbm [resolvable:$true] %s17_s26 }
   0x3   :  { %2873 = sst [smem:[#allocation37_spill]] %s2852_s6 }
   0x4   :  { %15 = dma.hbm_to_smem %s13_s23, 16, %s2326_s27, [#allocation3] }
   0x5   :  { %20 = dma.hbm_to_smem %s18_s26, 16, %s2327_s28, [#allocation3] }
   0x6   :  { %2252 = dma.done.wait [#allocation3], 32 }
   0x7   :  { %2253 = vsyncadd [#allocation3], 4294967264 }
   0x8   :  { %23 = sfence }
   0x9   :  { %24 = vsyncpa [#allocation7], 0 }
   0xa   :  { %26 = vsyncpa [#allocation7 + $0x1], 0 }
   0xb   :  { %27 = vsyncpa [#allocation10], 0 }
   0xc   :  { %29 = vsyncpa [#allocation10 + $0x1], 0 }
   0xd   :  { %30 = vsyncpa [#allocation8], 0 }
   0xe   :  { %32 = vsyncpa [#allocation8 + $0x1], 0  ;;  %s2378_s0 = smov 0   ;;  %s2380_s29 = smov 0  }
   0xf   :  { %s2382_s1 = smov 0   ;;  %s2384_s30 = smov 0  }
  0x10   :  { %s2386_s7 = smov 0   ;;  %s2388_s8 = smov 0  }
  0x11   :  { %s2390_s9 = smov 0   ;;  %s2392_s10 = smov 0  }
  0x12   :  { %s2394_s11 = smov 0   ;;  %s2396_s12 = smov 0  }
  0x13   :  { %s2398_s13 = smov 0   ;;  %s2400_s14 = smov 0  }
  0x14   :  { %s2402_s15 = smov 0   ;;  %s2404_s16 = smov 0  }
  0x15 LB: > { %2874 = sst [smem:[#allocation22_spill]] %s2272_s0  ;;  %s2445_s17 = sadd.s32 4294967295, %s2324_s16   ;;  %s2324_s16 = sphi %s2404_s16, %s38_s16   ;;  %s2320_s15 = sphi %s2402_s15, %s2926_s15   ;;  %s2316_s14 = sphi %s2400_s14, %s2934_s14   ;;  %s2312_s13 = sphi %s2398_s13, %s2924_s13   ;;  %s2308_s12 = sphi %s2396_s12, %s2933_s12   ;;  %s2304_s11 = sphi %s2394_s11, %s2932_s11   ;;  %s2300_s10 = sphi %s2392_s10, %s2931_s10   ;;  %s2296_s9 = sphi %s2390_s9, %s2930_s9   ;;  %s2292_s8 = sphi %s2388_s8, %s2929_s8   ;;  %s2288_s7 = sphi %s2386_s7, %s2928_s7   ;;  %s2284_s30 = sphi %s2384_s30, %s2927_s30   ;;  %s2280_s1 = sphi %s2382_s1, %s2921_s1   ;;  %s2276_s29 = sphi %s2380_s29, %s2920_s29   ;;  %s2272_s0 = sphi %s2378_s0, %s2919_s0  }
  0x16   : > { %2875 = sst [smem:[#allocation23_spill]] %s2276_s29  ;;  %p78_p0 = scmp.ne.s32.totalorder %s2300_s10, %s2296_s9 }
  0x17   : > { %2876 = sst [smem:[#allocation24_spill]] %s2280_s1  ;;  %p2869_p1 = scmp.eq.s32.totalorder %s2445_s17, 0 }
  0x18   : > { %2877 = sst [smem:[#allocation25_spill]] %s2308_s12  ;;  %s1444_s18 = sadd.s32 4294967294, %s2324_s16  }
  0x19   : > { %2878 = sst [smem:[#allocation26_spill]] %s2312_s13  ;;  %p110_p2 = scmp.ne.s32.totalorder %s2288_s7, %s2284_s30 }
  0x1a   : > { %2879 = sst [smem:[#allocation27_spill]] %s2316_s14  ;;  %p2453_p3 = por %p2869_p1, %p78_p0 }
  0x1b   : > { %2880 = sst [smem:[#allocation28_spill]] %s2320_s15  ;;  %p175_p4 = scmp.ne.s32.totalorder %s2280_s1, %s2276_s29 }
  0x1c   : > { %p2461_p5 = por %p110_p2, %p2869_p1  ;;  %p176_p6 = scmp.eq.s32.totalorder %s2445_s17, 3 }
  0x1d   : > { %p181_p7 = scmp.ne.s32.totalorder %s2276_s29, %s2272_s0  ;;  %p182_p8 = scmp.eq.s32.totalorder %s1444_s18, 3 }
  0x1e   : > { %p2468_p9 = por %p176_p6, %p175_p4  ;;  %p1449_p10 = scmp.ge.s32.totalorder %s2324_s16, 1 }
  0x1f   : > { %p2473_p11 = por %p182_p8, %p181_p7  ;;  %p189_p12 = scmp.lt.s32.totalorder %s2324_s16, 5 }
  0x20   : > { %s2883_s21 = scalar_select %p2468_p9, 1, 0 }
  0x21   : > { %s2885_s22 = scalar_select %p2473_p11, 1, 0 }
  0x22   : > { %2884 = sst [smem:[#allocation29_spill]] %s2883_s21  ;;  %p2481_p13 = pnand %p1449_p10, %p189_p12 }
  0x23   : > { %2886 = sst [smem:[#allocation30_spill]] %s2885_s22  ;;  %s2328_s27 = smov [#allocation11]  }
  0x24   : > { %s2887_s5 = sld [smem:[#allocation36_spill]]  ;;  %p1907_p0 = pneg %p2481_p13 }
  0x25   : > { %s205_s28 = sshll.u32 %s2328_s27, 4  ;;  %s2854_s30 = smov 64   ;;  %s206_s28 = int_to_ptr.vmem [resolvable:$true] %s205_s28 }
  0x26   : > { %p1908_p2 = pnand %p1907_p0, %p2869_p1  ;;  %s2855_s9 = smov 4  }
  0x27   : > { %s47_s18 = sadd.s32 1, %s2316_s14  ;;  %s50_s23 = sadd.s32 1, %s2320_s15 }
  0x28   : > { %p48_p4 = scmp.ge.s32.totalorder %s47_s18, 2  ;;  %s1445_s24 = sshll.u32 %s2320_s15, 1 }
  0x29   : > { %s2499_s27 = sadd.s32 %s2316_s14, %s1445_s24  ;;  %p72_p7 = scmp.ne.s32.totalorder %s2304_s11, %s2300_s10 }
  0x2a   : > { %s203_s25 = sshll.u32 %s2887_s5, 4  ;;  %s2936_s23 = smov (!%p48_p4, %s50_s23), %s2320_s15  ;;  %s204_s25 = int_to_ptr.hbm [resolvable:$true] %s203_s25 }
  0x2b   : > { %1910 = dma.hbm_to_vmem [thread:$0]  (!%p1908_p2), %s204_s25, 1024, %s206_s28, [#allocation10], %s2854_s30, %s2854_s30, %s2855_s9  }
  0x2c   : > { %s2938_s18 = smov (%p48_p4, %s47_s18), 0  ;;  %p52_p6 = scmp.ge.s32.totalorder %s2936_s23, 2 }
  0x2d   : > { %2889 = sst [smem:[#allocation31_spill]] %s2938_s18  ;;  %p73_p8 = scmp.eq.s32.totalorder %s2324_s16, 0 }
  0x2e   : > { %s2940_s23 = smov (%p52_p6, %s2936_s23), 0  ;;  %s165_s25 = sadd.s32 1, %s2280_s1 }
  0x2f   : > { %2890 = sst [smem:[#allocation32_spill]] %s2940_s23  ;;  %s1446_s30 = sshll.u32 %s2940_s23, 1 }
  0x30   : > { %s56_s28 = sld [smem:[#allocation5 + %s2499_s27]]  ;;  %s60_s9 = ssub.s32 %s2320_s15, %s2940_s23 }
  0x31   : > { %s58_s5 = sadd.s32 %s1446_s30, %s2938_s18  ;;  %p163_p10 = scmp.eq.s32.totalorder %s60_s9, 0 }
  0x32   : > { %s59_s24 = sld [smem:[#allocation5 + %s58_s5]]  ;;  %p2514_p12 = por %p73_p8, %p72_p7 }
  0x33   : > { %p2870_p0 = scmp.lt.s32.totalorder %s2324_s16, 4  ;;  %s2865_s22 = sand.u32 1, %s2304_s11  }
  0x34   : > { %s2521_s0 = scalar_select %p163_p10, %s2280_s1, %s165_s25  }
  0x35   : > { %s65_s30 = sadd.s32 1, %s2304_s11  ;;  %s90_s23 = sld [smem:[#allocation5 + %s2499_s27]] }
  0x36   : > { %2892 = sst [smem:[#allocation33_spill]] %s2521_s0  ;;  %s1452_s18 = sshll.u32 %s2865_s22, 8 }
  0x37   : > { %p2531_p2 = pnand %p2870_p0, %p2514_p12  ;;  %s93_s13 = sld [smem:[#allocation5 + %s58_s5]] }
  0x38   : > { %s1895_s21 = scalar_select %p2514_p12, [#allocation5], [#allocation13] }
  0x39   : > { %s61_s4 = ssub.s32 %s56_s28, %s59_s24  ;;  %s1699_s22 = sshll.u32 %s2320_s15, 7 }
  0x3a   : > { %s62_s25 = sor.u32 %s61_s4, %s60_s9  ;;  %s2942_s21 = smov (!%p2870_p0, %s1895_s21), [#allocation15] }
  0x3b   : > { %p63_p4 = scmp.eq.s32.totalorder %s62_s25, 0  ;;  %s223_s29 = scalar_lea.vmem [#allocation6], %s1452_s18 }
  0x3c   : > { %s1896_s0 = scalar_select %p2514_p12, %s2499_s27, 0 }
  0x3d   : > { %s2541_s1 = scalar_select %p63_p4, %s2304_s11, %s65_s30  }
  0x3e   : > { %s2944_s0 = smov (!%p2870_p0, %s1896_s0), 0  ;;  %s2548_s28 = sshll.u32 %s223_s29, 4  ;;  %s238_s28 = int_to_ptr.vmem [resolvable:$true] %s2548_s28 }
  0x3f   : > { %2894 = sst [smem:[#allocation34_spill]] %s2541_s1  ;;  %s94_s5 = ssub.s32 %s90_s23, %s93_s13 }
  0x40   : > { %s226_s12 = sld [smem:[%s2942_s21 + %s2944_s0]]  ;;  %p95_p6 = scmp.eq.s32.totalorder %s94_s5, 0 }
  0x41   : > { %s97_s4 = sadd.s32 1, %s2292_s8  ;;  %p104_p7 = scmp.ne.s32.totalorder %s2292_s8, %s2288_s7 }
  0x42   : > { %s2553_s14 = scalar_select %p95_p6, %s2292_s8, %s97_s4  }
  0x43   : > { %s249_s25 = sand.u32 1, %s2292_s8   ;;  %p2563_p10 = por %p104_p7, %p73_p8 }
  0x44   : > { %s1458_s21 = sshll.u32 %s249_s25, 7  ;;  %s2896_s18 = sand.u32 1, %s2304_s11  }
  0x45   : > { %s220_s23 = scalar_lea.sflag [#allocation7], %s2896_s18  ;;  %p2112_p4 = pneg %p2531_p2 }
  0x46   : > { %s1455_s9 = sshll.u32 %s226_s12, 1 }
  0x47   : > { %s232_s24 = sadd.s32 %s1699_s22, %s1455_s9  ;;  %s2115_s22 = scalar_lea.hbm %s2848_s2, 1024 }
  0x48   : > { %s1457_s30 = sshll.u32 %s232_s24, 2 }
  0x49   : > { %s234_s0 = scalar_lea.hbm %s2848_s2, %s1457_s30 }
  0x4a   : > { %s235_s13 = sshll.u32 %s234_s0, 4  ;;  %s236_s13 = int_to_ptr.hbm [resolvable:$true] %s235_s13 }
  0x4b   : > { %s2108_s5 = sshra.s32 %s236_s13, 4  ;;  %s2109_s5 = int_to_ptr.hbm [resolvable:$true] %s2108_s5 }
  0x4c   : > { %s2110_s12 = scalar_lea.hbm %s2109_s5, 256  ;;  %p2116_p8 = scmp.lt.s32.totalorder %s2109_s5, %s2848_s2 }
  0x4d   : > { %p2111_p12 = scmp.ne.s32.totalorder %s2109_s5, %s2110_s12  ;;  %p2117_p7 = scmp.lt.s32.totalorder %s2115_s22, %s2110_s12 }
  0x4f   : > { %p2113_p6 = pnand %p2112_p4, %p2111_p12  ;;  %p2118_p0 = por %p2117_p7, %p2116_p8 }
  0x51   : > { %p2114_p1 = pneg %p2113_p6 }
  0x53   : > { %p2119_p11 = pnand %p2118_p0, %p2114_p1 }
  0x55   : > { %2122 = shalt.err (!%p2119_p11)
}
  0x56   : > { %s2331_s24 = smov 256   ;;  %s2332_s30 = smov 128  }
  0x57   : > { %s2333_s25 = smov 8   ;;  %s2946_s27 = smov (!%p2563_p10, %s2499_s27), 0 }
  0x58   : > { %1916 = dma.hbm_to_vmem [thread:$0]  (!%p2531_p2), %s236_s13, 4096, %s238_s28, %s220_s23, %s2331_s24, %s2332_s30, %s2333_s25  }
  0x59   : > { %s1898_s0 = scalar_select %p2563_p10, [#allocation5], [#allocation14] }
  0x5a   : > { %p2897_p1 = scmp.lt.s32.totalorder %s2324_s16, 4  ;;  %s247_s12 = sand.u32 1, %s2324_s16  }
  0x5b   : > { %s251_s6 = scalar_lea.vmem [#allocation9], %s1458_s21  ;;  %s248_s4 = scalar_lea.sflag [#allocation10], %s247_s12 }
  0x5c   : > { %s2948_s0 = smov (!%p2897_p1, %s1898_s0), [#allocation16]  ;;  %p2898_p11 = pmov %p2897_p1 }
  0x5d   : > { %p2899_p0 = pmov %p2897_p1  ;;  %s262_s1 = sshll.u32 %s251_s6, 4  ;;  %s263_s1 = int_to_ptr.vmem [resolvable:$true] %s262_s1 }
  0x5e   : > { %s2950_s27 = smov (!%p2898_p11, %s2946_s27), 0  ;;  %s2145_s24 = scalar_lea.hbm %s2849_s3, 256 }
  0x5f   : > { %p2594_p12 = pnand %p2899_p0, %p2563_p10  ;;  %s254_s5 = sld [smem:[%s2948_s0 + %s2950_s27]] }
  0x61   : > { %p2142_p10 = pneg %p2594_p12 }
  0x65   : > { %s1700_s28 = sshll.u32 %s254_s5, 7 }
  0x66   : > { %s259_s15 = scalar_lea.hbm %s2849_s3, %s1700_s28 }
  0x67   : > { %s260_s22 = sshll.u32 %s259_s15, 4  ;;  %s261_s22 = int_to_ptr.hbm [resolvable:$true] %s260_s22 }
  0x68   : > { %s2138_s29 = sshra.s32 %s261_s22, 4  ;;  %s2139_s29 = int_to_ptr.hbm [resolvable:$true] %s2138_s29 }
  0x69   : > { %s2140_s9 = scalar_lea.hbm %s2139_s29, 128  ;;  %p2146_p8 = scmp.lt.s32.totalorder %s2139_s29, %s2849_s3 }
  0x6a   : > { %p2141_p2 = scmp.ne.s32.totalorder %s2139_s29, %s2140_s9  ;;  %p2147_p7 = scmp.lt.s32.totalorder %s2145_s24, %s2140_s9 }
  0x6c   : > { %p2143_p4 = pnand %p2142_p10, %p2141_p2  ;;  %p2148_p1 = por %p2147_p7, %p2146_p8 }
  0x6e   : > { %p2144_p6 = pneg %p2143_p4 }
  0x70   : > { %p2149_p11 = pnand %p2148_p1, %p2144_p6 }
  0x72   : > { %2152 = shalt.err (!%p2149_p11)
}
  0x73   : > { %s2901_s0 = smov 4   ;;  %s2902_s5 = smov 64  }
  0x74   : > { %1921 = dma.hbm_to_vmem [thread:$0]  (!%p2594_p12), %s261_s22, 2048, %s263_s1, %s248_s4, %s2902_s5, %s2902_s5, %s2901_s0  }
  0x75   : > { %274 = sbr.rel (%p2481_p13) target bundleno = 746 (0x2ea), region = 36  ;;  %s276_s12 = sand.u32 (!%p2481_p13), 1, %s2300_s10  }
  0x76   : > { %s1463_s6 = sshll.u32 (!%p2481_p13), %s276_s12, 8  ;;  %s277_s28 = scalar_lea.sflag (!%p2481_p13), [#allocation7], %s276_s12 }
  0x77   : > { %s2618_s13 = scalar_lea.vmem (!%p2481_p13), [#allocation6], %s1463_s6 }
  0x7a   : > { %2255 = dma.done.wait (%p2453_p3), %s277_s28, 4096  }
  0x7b   : > { %2257 = vsyncadd (%p2453_p3), %s277_s28, 4294963200  ;;  %s286_s18 = sand.u32 1, %s2445_s17   ;;  %s288_s1 = sand.u32 1, %s2288_s7  }
  0x7c   : > { %s1464_s23 = sshll.u32 %s288_s1, 7  ;;  %s287_s26 = scalar_lea.sflag [#allocation10], %s286_s18 }
  0x7d   : > { %s2626_s15 = scalar_lea.vmem [#allocation9], %s1464_s23 }
  0x7e   : > { %2259 = dma.done.wait (%p2461_p5), %s287_s26, 2048  }
  0x7f   : > { %2261 = vsyncadd (%p2461_p5), %s287_s26, 4294965248  ;;  %p2903_p13 = scmp.eq.s32.totalorder %s2445_s17, 0 }
  0x81   : > { %2263 = dma.done.wait (%p2903_p13), [#allocation10], 1024   ;;  %p2904_p0 = pmov %p2903_p13 }
  0x82   : > { %s2905_s19 = sld [smem:[#allocation23_spill]] }
  0x83   : > { %2265 = vsyncadd (%p2904_p0), [#allocation10], 4294966272  ;;  %s2906_s9 = sld [smem:[#allocation25_spill]] }
  0x88   : > { %s323_s22 = sand.u32 1, %s2905_s19  }
  0x89   : > { %s1466_s4 = sshll.u32 %s323_s22, 7  ;;  %p1467_p3 = scmp.ne.s32.totalorder %s2906_s9, 0 }
  0x8a   : > { %s2639_s29 = scalar_lea.vmem [#allocation12], %s1466_s4 }
  0x8b   : > { %339 = sbr.rel (%p1467_p3) target bundleno = 177 (0xb1), region = 52 }
  0x90   : > { %v2334_v0 = vmov 0.0  }
  0x91   : > { %340 = vst [vmem:[#allocation2 + $0xb0] sm:$0xff] %v2334_v0 }
  0x92   : > { %341 = vst [vmem:[#allocation2] sm:$0xff] %v2334_v0 }
  0x93   : > { %342 = vst [vmem:[#allocation2 + $0xd8] sm:$0xff] %v2334_v0 }
  0x94   : > { %343 = vst [vmem:[#allocation2 + $0x18] sm:$0xff] %v2334_v0 }
  0x95   : > { %344 = vst [vmem:[#allocation2 + $0x50] sm:$0xff] %v2334_v0 }
  0x96   : > { %345 = vst [vmem:[#allocation2 + $0x68] sm:$0xff] %v2334_v0 }
  0x97   : > { %346 = vst [vmem:[#allocation2 + $0x30] sm:$0xff] %v2334_v0 }
  0x98   : > { %347 = vst [vmem:[#allocation2 + $0x48] sm:$0xff] %v2334_v0 }
  0x99   : > { %348 = vst [vmem:[#allocation2 + $0x80] sm:$0xff] %v2334_v0 }
  0x9a   : > { %349 = vst [vmem:[#allocation2 + $0x88] sm:$0xff] %v2334_v0 }
  0x9b   : > { %350 = vst [vmem:[#allocation2 + $0xe8] sm:$0xff] %v2334_v0 }
  0x9c   : > { %351 = vst [vmem:[#allocation2 + $0xb8] sm:$0xff] %v2334_v0 }
  0x9d   : > { %352 = vst [vmem:[#allocation2 + $0x60] sm:$0xff] %v2334_v0 }
  0x9e   : > { %353 = vst [vmem:[#allocation2 + $0xf0] sm:$0xff] %v2334_v0 }
  0x9f   : > { %354 = vst [vmem:[#allocation2 + $0x8] sm:$0xff] %v2334_v0 }
  0xa0   : > { %355 = vst [vmem:[#allocation2 + $0x78] sm:$0xff] %v2334_v0 }
  0xa1   : > { %356 = vst [vmem:[#allocation2 + $0x38] sm:$0xff] %v2334_v0 }
  0xa2   : > { %357 = vst [vmem:[#allocation2 + $0x58] sm:$0xff] %v2334_v0 }
  0xa3   : > { %358 = vst [vmem:[#allocation2 + $0x40] sm:$0xff] %v2334_v0 }
  0xa4   : > { %359 = vst [vmem:[#allocation2 + $0xc8] sm:$0xff] %v2334_v0 }
  0xa5   : > { %360 = vst [vmem:[#allocation2 + $0xe0] sm:$0xff] %v2334_v0 }
  0xa6   : > { %361 = vst [vmem:[#allocation2 + $0x90] sm:$0xff] %v2334_v0 }
  0xa7   : > { %362 = vst [vmem:[#allocation2 + $0x70] sm:$0xff] %v2334_v0 }
  0xa8   : > { %363 = vst [vmem:[#allocation2 + $0xc0] sm:$0xff] %v2334_v0 }
  0xa9   : > { %364 = vst [vmem:[#allocation2 + $0xa8] sm:$0xff] %v2334_v0 }
  0xaa   : > { %365 = vst [vmem:[#allocation2 + $0xd0] sm:$0xff] %v2334_v0 }
  0xab   : > { %366 = vst [vmem:[#allocation2 + $0x10] sm:$0xff] %v2334_v0 }
  0xac   : > { %367 = vst [vmem:[#allocation2 + $0x28] sm:$0xff] %v2334_v0 }
  0xad   : > { %368 = vst [vmem:[#allocation2 + $0xa0] sm:$0xff] %v2334_v0 }
  0xae   : > { %369 = vst [vmem:[#allocation2 + $0xf8] sm:$0xff] %v2334_v0 }
  0xaf   : > { %370 = vst [vmem:[#allocation2 + $0x20] sm:$0xff] %v2334_v0 }
  0xb0   : > { %371 = vst [vmem:[#allocation2 + $0x98] sm:$0xff] %v2334_v0 }
  0xb1 PF: > { %s2907_s17 = sld [smem:[#allocation26_spill]] }
  0xb2   : > { %s2908_s27 = sld [smem:[#allocation25_spill]] }
  0xb7   : > { %s372_s20 = sld [smem:[#allocation4 + %s2907_s17]] }
  0xbd   : > { %p1468_p5 = scmp.ge.s32.totalorder %s2908_s27, %s372_s20 }
  0xbf   : > { %376 = sbr.rel (%p1468_p5) target bundleno = 486 (0x1e6), region = 56 }
  0xc4   : > { %v1740_v1 = vld [vmem:[%s2626_s15 + $0x38] sm:$0xff]  ;;  %v1739_v3 = vld [vmem:[%s2626_s15 + $0x30] sm:$0xff]  ;;  %v1738_v5 = vld [vmem:[%s2626_s15 + $0x28] sm:$0xff] }
  0xc5   : > { %v1748_v2 = vld [vmem:[%s2626_s15 + $0x78] sm:$0xff]  ;;  %729 = vmatpush.bf16.msra.mxu0 %v1740_v1  ;;  %1853 = vmatpush.bf16.msra.mxu2 %v1740_v1  ;;  %v1747_v4 = vld [vmem:[%s2626_s15 + $0x70] sm:$0xff]  ;;  %v1746_v6 = vld [vmem:[%s2626_s15 + $0x68] sm:$0xff] }
  0xc6   : > { %818 = vmatpush.bf16.msra.mxu1 %v1748_v2  ;;  %1861 = vmatpush.bf16.msra.mxu3 %v1748_v2  ;;  %v1737_v7 = vld [vmem:[%s2626_s15 + $0x20] sm:$0xff]  ;;  %v1736_v9 = vld [vmem:[%s2626_s15 + $0x18] sm:$0xff]  ;;  %v1735_v11 = vld [vmem:[%s2626_s15 + $0x10] sm:$0xff] }
  0xc7   : > { %v1745_v8 = vld [vmem:[%s2626_s15 + $0x60] sm:$0xff]  ;;  %v1744_v10 = vld [vmem:[%s2626_s15 + $0x58] sm:$0xff]  ;;  %v1743_v12 = vld [vmem:[%s2626_s15 + $0x50] sm:$0xff] }
  0xc8   : > { %v1734_v13 = vld [vmem:[%s2626_s15 + $0x8] sm:$0xff]  ;;  %v1733_v15 = vld [vmem:[%s2626_s15] sm:$0xff]  ;;  %v1479_v29 = vld [vmem:[%s2618_s13 + $0x10] sm:$0xf] }
  0xc9   : > { %730 = vmatpush.bf16.msra.mxu0 %v1739_v3  ;;  %1854 = vmatpush.bf16.msra.mxu2 %v1739_v3  ;;  %v1742_v14 = vld [vmem:[%s2626_s15 + $0x48] sm:$0xff]  ;;  %v1741_v16 = vld [vmem:[%s2626_s15 + $0x40] sm:$0xff]  ;;  %v1704_v30 = vld [vmem:[%s2618_s13 + $0x14] sm:$0xf0] }
  0xca   : > { %819 = vmatpush.bf16.msra.mxu1 %v1747_v4  ;;  %1862 = vmatpush.bf16.msra.mxu3 %v1747_v4  ;;  %v1471_v17 = vld [vmem:[%s2618_s13] sm:$0xf]  ;;  %v1702_v18 = vld [vmem:[%s2618_s13 + $0x4] sm:$0xf0]  ;;  %v1701_v21 = vld [vmem:[%s2618_s13 + $0x4] sm:$0xf]  ;;  %v1480_v37 = vor.u32 %v1704_v30, %v1479_v29 }
  0xcb   : > { %v1535_v19 = vld [vmem:[%s2618_s13 + $0x80] sm:$0xf]  ;;  %v1718_v20 = vld [vmem:[%s2618_s13 + $0x84] sm:$0xf0]  ;;  %v1473_v22 = vld [vmem:[%s2618_s13 + $0x8] sm:$0xf0]  ;;  %v1472_v25 = vor.u32 %v1702_v18, %v1471_v17 }
  0xcc   : > { %v1717_v23 = vld [vmem:[%s2618_s13 + $0x84] sm:$0xf]  ;;  %v1537_v24 = vld [vmem:[%s2618_s13 + $0x88] sm:$0xf0]  ;;  %v1536_v26 = vor.u32 %v1718_v20, %v1535_v19  ;;  %v1476_v27 = vor.u32 %v1701_v21, %v1473_v22  ;;  %v1543_v31 = vld [vmem:[%s2618_s13 + $0x90] sm:$0xf] }
  0xcd   : > { %731 = vmatpush.bf16.msra.mxu0 %v1738_v5  ;;  %1855 = vmatpush.bf16.msra.mxu2 %v1738_v5  ;;  %v1540_v28 = vor.u32 %v1717_v23, %v1537_v24  ;;  %v1720_v32 = vld [vmem:[%s2618_s13 + $0x94] sm:$0xf0]  ;;  %v1703_v33 = vld [vmem:[%s2618_s13 + $0x14] sm:$0xf]  ;;  %v1481_v34 = vld [vmem:[%s2618_s13 + $0x18] sm:$0xf0] }
  0xce   : > { %820 = vmatpush.bf16.msra.mxu1 %v1746_v6  ;;  %1863 = vmatpush.bf16.msra.mxu3 %v1746_v6  ;;  %v1719_v35 = vld [vmem:[%s2618_s13 + $0x94] sm:$0xf]  ;;  %v1545_v36 = vld [vmem:[%s2618_s13 + $0x98] sm:$0xf0]  ;;  %v1544_v38 = vor.u32 %v1720_v32, %v1543_v31  ;;  %v1484_v39 = vor.u32 %v1703_v33, %v1481_v34  ;;  %v1487_v41 = vld [vmem:[%s2618_s13 + $0x20] sm:$0xf] }
  0xcf   : > { %v1548_v40 = vor.u32 %v1719_v35, %v1545_v36  ;;  %v1706_v42 = vld [vmem:[%s2618_s13 + $0x24] sm:$0xf0]  ;;  %v1551_v43 = vld [vmem:[%s2618_s13 + $0xa0] sm:$0xf]  ;;  %v1705_v45 = vld [vmem:[%s2618_s13 + $0x24] sm:$0xf] }
  0xd0   : > { %v1722_v44 = vld [vmem:[%s2618_s13 + $0xa4] sm:$0xf0]  ;;  %v1489_v46 = vld [vmem:[%s2618_s13 + $0x28] sm:$0xf0]  ;;  %v1721_v47 = vld [vmem:[%s2618_s13 + $0xa4] sm:$0xf]  ;;  %v1488_v49 = vor.u32 %v1706_v42, %v1487_v41 }
  0xd1   : > { %732 = vmatpush.bf16.msra.mxu0 %v1737_v7  ;;  %1856 = vmatpush.bf16.msra.mxu2 %v1737_v7  ;;  %v1553_v48 = vld [vmem:[%s2618_s13 + $0xa8] sm:$0xf0]  ;;  %v1552_v50 = vor.u32 %v1722_v44, %v1551_v43  ;;  %v1492_v51 = vor.u32 %v1705_v45, %v1489_v46  ;;  %v1495_v53 = vld [vmem:[%s2618_s13 + $0x30] sm:$0xf]  ;;  %v1708_v54 = vld [vmem:[%s2618_s13 + $0x34] sm:$0xf0] }
  0xd2   : > { %821 = vmatpush.bf16.msra.mxu1 %v1745_v8  ;;  %1864 = vmatpush.bf16.msra.mxu3 %v1745_v8  ;;  %v1556_v52 = vor.u32 %v1721_v47, %v1553_v48  ;;  %v1559_v55 = vld [vmem:[%s2618_s13 + $0xb0] sm:$0xf]  ;;  %v1724_v56 = vld [vmem:[%s2618_s13 + $0xb4] sm:$0xf0]  ;;  %v1707_v57 = vld [vmem:[%s2618_s13 + $0x34] sm:$0xf]  ;;  %v1496_v61 = vor.u32 %v1708_v54, %v1495_v53 }
  0xd3   : > { %v1497_v58 = vld [vmem:[%s2618_s13 + $0x38] sm:$0xf0]  ;;  %v1723_v59 = vld [vmem:[%s2618_s13 + $0xb4] sm:$0xf]  ;;  %v1560_v62 = vor.u32 %v1724_v56, %v1559_v55  ;;  %v1503_v1 = vld [vmem:[%s2618_s13 + $0x40] sm:$0xf] }
  0xd4   : > { %v1561_v60 = vld [vmem:[%s2618_s13 + $0xb8] sm:$0xf0]  ;;  %v1500_v63 = vor.u32 %v1707_v57, %v1497_v58  ;;  %v1710_v2 = vld [vmem:[%s2618_s13 + $0x44] sm:$0xf0]  ;;  %v1567_v3 = vld [vmem:[%s2618_s13 + $0xc0] sm:$0xf] }
  0xd5   : > { %733 = vmatpush.bf16.msra.mxu0 %v1736_v9  ;;  %1857 = vmatpush.bf16.msra.mxu2 %v1736_v9  ;;  %v1564_v0 = vor.u32 %v1723_v59, %v1561_v60  ;;  %v1726_v4 = vld [vmem:[%s2618_s13 + $0xc4] sm:$0xf0]  ;;  %v1709_v5 = vld [vmem:[%s2618_s13 + $0x44] sm:$0xf]  ;;  %v1505_v6 = vld [vmem:[%s2618_s13 + $0x48] sm:$0xf0]  ;;  %v1504_v9 = vor.u32 %v1710_v2, %v1503_v1 }
  0xd6   : > { %822 = vmatpush.bf16.msra.mxu1 %v1744_v10  ;;  %1865 = vmatpush.bf16.msra.mxu3 %v1744_v10  ;;  %v1725_v7 = vld [vmem:[%s2618_s13 + $0xc4] sm:$0xf]  ;;  %v1569_v8 = vld [vmem:[%s2618_s13 + $0xc8] sm:$0xf0]  ;;  %v1568_v10 = vor.u32 %v1726_v4, %v1567_v3  ;;  %v1711_v17 = vld [vmem:[%s2618_s13 + $0x54] sm:$0xf] }
  0xd7   : > { %v1513_v18 = vld [vmem:[%s2618_s13 + $0x58] sm:$0xf0]  ;;  %v1727_v19 = vld [vmem:[%s2618_s13 + $0xd4] sm:$0xf]  ;;  %v1713_v29 = vld [vmem:[%s2618_s13 + $0x64] sm:$0xf] }
  0xd8   : > { %v1577_v20 = vld [vmem:[%s2618_s13 + $0xd8] sm:$0xf0]  ;;  %v1516_v23 = vor.u32 %v1711_v17, %v1513_v18  ;;  %v1521_v30 = vld [vmem:[%s2618_s13 + $0x68] sm:$0xf0]  ;;  %v1729_v31 = vld [vmem:[%s2618_s13 + $0xe4] sm:$0xf] }
  0xd9   : > { %734 = vmatpush.bf16.msra.mxu0 %v1735_v11  ;;  %1858 = vmatpush.bf16.msra.mxu2 %v1735_v11  ;;  %v1508_v11 = vor.u32 %v1709_v5, %v1505_v6  ;;  %v1580_v24 = vor.u32 %v1727_v19, %v1577_v20  ;;  %v1585_v32 = vld [vmem:[%s2618_s13 + $0xe8] sm:$0xf0]  ;;  %v1524_v35 = vor.u32 %v1713_v29, %v1521_v30  ;;  %v1715_v41 = vld [vmem:[%s2618_s13 + $0x74] sm:$0xf]  ;;  %v1529_v42 = vld [vmem:[%s2618_s13 + $0x78] sm:$0xf0] }
  0xda   : > { %823 = vmatpush.bf16.msra.mxu1 %v1743_v12  ;;  %1866 = vmatpush.bf16.msra.mxu3 %v1743_v12  ;;  %v1572_v12 = vor.u32 %v1725_v7, %v1569_v8  ;;  %v1588_v36 = vor.u32 %v1729_v31, %v1585_v32  ;;  %v1731_v43 = vld [vmem:[%s2618_s13 + $0xf4] sm:$0xf]  ;;  %v1593_v44 = vld [vmem:[%s2618_s13 + $0xf8] sm:$0xf0]  ;;  %v1532_v47 = vor.u32 %v1715_v41, %v1529_v42  ;;  %v378_v59 = vld [vmem:[#allocation2] sm:$0xff] }
  0xdb   : > { %v1596_v48 = vor.u32 %v1731_v43, %v1593_v44  ;;  %v393_v55 = vld [vmem:[#allocation2 + $0x38] sm:$0xff]  ;;  %v397_v31 = vld [vmem:[#allocation2 + $0xe0] sm:$0xff]  ;;  %v398_v41 = vld [vmem:[#allocation2 + $0x90] sm:$0xff] }
  0xdc   : > { %v394_v1 = vld [vmem:[#allocation2 + $0x58] sm:$0xff] }
  0xdd   : > { %735 = vmatpush.bf16.msra.mxu0 %v1734_v13  ;;  %1859 = vmatpush.bf16.msra.mxu2 %v1734_v13  ;;  %v1511_v13 = vld [vmem:[%s2618_s13 + $0x50] sm:$0xf]  ;;  %v379_v5 = vld [vmem:[#allocation2 + $0xd8] sm:$0xff] }
  0xde   : > { %824 = vmatpush.bf16.msra.mxu1 %v1742_v14  ;;  %1867 = vmatpush.bf16.msra.mxu3 %v1742_v14  ;;  %v1712_v14 = vld [vmem:[%s2618_s13 + $0x54] sm:$0xf0] }
  0xdf   : > { %v1512_v21 = vor.u32 %v1712_v14, %v1511_v13 }
  0xe1   : > { %736 = vmatpush.bf16.msra.mxu0 %v1733_v15  ;;  %1860 = vmatpush.bf16.msra.mxu2 %v1733_v15  ;;  %v1575_v15 = vld [vmem:[%s2618_s13 + $0xd0] sm:$0xf] }
  0xe2   : > { %825 = vmatpush.bf16.msra.mxu1 %v1741_v16  ;;  %1868 = vmatpush.bf16.msra.mxu3 %v1741_v16  ;;  %v1728_v16 = vld [vmem:[%s2618_s13 + $0xd4] sm:$0xf0] }
  0xe3   : > { %v1576_v22 = vor.u32 %v1728_v16, %v1575_v15  ;;  %v380_v15 = vld [vmem:[#allocation2 + $0x18] sm:$0xff] }
  0xe4   : > { %737 = vmatmul.bf16.vlgmr.msra.gmra.mxu0 %v1472_v25  ;;  %777 = vmatmul.bf16.vlgmr.msra.gmra.mxu2 %v1536_v26  ;;  %v1519_v25 = vld [vmem:[%s2618_s13 + $0x60] sm:$0xf]  ;;  %v1714_v26 = vld [vmem:[%s2618_s13 + $0x64] sm:$0xf0] }
  0xe5   : > { %826 = vmatmul.bf16.vlgmr.msra.gmra.mxu1 %v1476_v27  ;;  %866 = vmatmul.bf16.vlgmr.msra.gmra.mxu3 %v1540_v28  ;;  %v1583_v27 = vld [vmem:[%s2618_s13 + $0xe0] sm:$0xf]  ;;  %v1730_v28 = vld [vmem:[%s2618_s13 + $0xe4] sm:$0xf0]  ;;  %v1520_v33 = vor.u32 %v1714_v26, %v1519_v25  ;;  %v381_v25 = vld [vmem:[#allocation2 + $0x50] sm:$0xff] }
  0xe6   : > { %v1584_v34 = vor.u32 %v1730_v28, %v1583_v27 }
  0xf4   : > { %742 = vmatmul.bf16.gmra.mxu0 %v1480_v37  ;;  %782 = vmatmul.bf16.gmra.mxu2 %v1544_v38  ;;  %v1527_v37 = vld [vmem:[%s2618_s13 + $0x70] sm:$0xf]  ;;  %v1716_v38 = vld [vmem:[%s2618_s13 + $0x74] sm:$0xf0] }
  0xf5   : > { %831 = vmatmul.bf16.gmra.mxu1 %v1484_v39  ;;  %871 = vmatmul.bf16.gmra.mxu3 %v1548_v40  ;;  %v1591_v39 = vld [vmem:[%s2618_s13 + $0xf0] sm:$0xf]  ;;  %v1732_v40 = vld [vmem:[%s2618_s13 + $0xf4] sm:$0xf0]  ;;  %v1528_v45 = vor.u32 %v1716_v38, %v1527_v37 }
  0xf6   : > { %v1592_v46 = vor.u32 %v1732_v40, %v1591_v39 }
 0x104   : > { %747 = vmatmul.bf16.gmra.mxu0 %v1488_v49  ;;  %787 = vmatmul.bf16.gmra.mxu2 %v1552_v50  ;;  %v377_v50 = vld [vmem:[#allocation2 + $0xb0] sm:$0xff] }
 0x105   : > { %836 = vmatmul.bf16.gmra.mxu1 %v1492_v51  ;;  %876 = vmatmul.bf16.gmra.mxu3 %v1556_v52 }
 0x114   : > { %752 = vmatmul.bf16.gmra.mxu0 %v1496_v61  ;;  %792 = vmatmul.bf16.gmra.mxu2 %v1560_v62 }
 0x115   : > { %841 = vmatmul.bf16.gmra.mxu1 %v1500_v63  ;;  %881 = vmatmul.bf16.gmra.mxu3 %v1564_v0 }
 0x124   : > { %757 = vmatmul.bf16.gmra.mxu0 %v1504_v9  ;;  %797 = vmatmul.bf16.gmra.mxu2 %v1568_v10 }
 0x125   : > { %846 = vmatmul.bf16.gmra.mxu1 %v1508_v11  ;;  %886 = vmatmul.bf16.gmra.mxu3 %v1572_v12  ;;  %v395_v11 = vld [vmem:[#allocation2 + $0x40] sm:$0xff] }
 0x134   : > { %762 = vmatmul.bf16.gmra.mxu0 %v1512_v21  ;;  %802 = vmatmul.bf16.gmra.mxu2 %v1576_v22  ;;  %v396_v21 = vld [vmem:[#allocation2 + $0xc8] sm:$0xff] }
 0x135   : > { %851 = vmatmul.bf16.gmra.mxu1 %v1516_v23  ;;  %891 = vmatmul.bf16.gmra.mxu3 %v1580_v24 }
 0x144   : > { %767 = vmatmul.bf16.gmra.mxu0 %v1520_v33  ;;  %807 = vmatmul.bf16.gmra.mxu2 %v1584_v34 }
 0x145   : > { %856 = vmatmul.bf16.gmra.mxu1 %v1524_v35  ;;  %896 = vmatmul.bf16.gmra.mxu3 %v1588_v36  ;;  %v382_v35 = vld [vmem:[#allocation2 + $0x68] sm:$0xff] }
 0x154   : > { %772 = vmatmul.bf16.gmra.mxu0 %v1528_v45  ;;  %812 = vmatmul.bf16.gmra.mxu2 %v1592_v46  ;;  %v383_v45 = vld [vmem:[#allocation2 + $0x30] sm:$0xff] }
 0x155   : > { %861 = vmatmul.bf16.gmra.mxu1 %v1532_v47  ;;  %901 = vmatmul.bf16.gmra.mxu3 %v1596_v48 }
 0x161   : > { %v738_v49 = vpop.f32.mrf.mxu0 }
 0x162   : > { %v827_v51 = vpop.f32.mrf.mxu1 }
 0x163   : > { %v828_v52 = vadd.f32 %v827_v51, %v738_v49  ;;  %v399_v51 = vld [vmem:[#allocation2 + $0x70] sm:$0xff] }
 0x165   : > { %v907_v53 = vadd.f32 %v828_v52, %v377_v50 }
 0x167   : > { %939 = vst [vmem:[#allocation2 + $0xb0] sm:$0xff] %v907_v53  ;;  %v778_v54 = vpop.f32.mrf.mxu2 }
 0x168   : > { %v867_v56 = vpop.f32.mrf.mxu3 }
 0x169   : > { %v868_v57 = vadd.f32 %v867_v56, %v778_v54  ;;  %v740_v58 = vpop.f32.mrf.mxu0 }
 0x16a   : > { %v829_v60 = vpop.f32.mrf.mxu1 }
 0x16b   : > { %v923_v61 = vadd.f32 %v868_v57, %v393_v55  ;;  %v830_v62 = vadd.f32 %v829_v60, %v740_v58  ;;  %v384_v55 = vld [vmem:[#allocation2 + $0x48] sm:$0xff] }
 0x16d   : > { %955 = vst [vmem:[#allocation2 + $0x38] sm:$0xff] %v923_v61  ;;  %v908_v63 = vadd.f32 %v830_v62, %v378_v59  ;;  %v400_v61 = vld [vmem:[#allocation2 + $0xc0] sm:$0xff] }
 0x16f   : > { %940 = vst [vmem:[#allocation2] sm:$0xff] %v908_v63  ;;  %v780_v0 = vpop.f32.mrf.mxu2 }
 0x170   : > { %v869_v2 = vpop.f32.mrf.mxu3 }
 0x171   : > { %v870_v3 = vadd.f32 %v869_v2, %v780_v0  ;;  %v743_v4 = vpop.f32.mrf.mxu0 }
 0x172   : > { %v832_v6 = vpop.f32.mrf.mxu1 }
 0x173   : > { %v924_v7 = vadd.f32 %v870_v3, %v394_v1  ;;  %v833_v8 = vadd.f32 %v832_v6, %v743_v4  ;;  %v385_v1 = vld [vmem:[#allocation2 + $0x80] sm:$0xff] }
 0x175   : > { %956 = vst [vmem:[#allocation2 + $0x58] sm:$0xff] %v924_v7  ;;  %v909_v9 = vadd.f32 %v833_v8, %v379_v5  ;;  %v401_v7 = vld [vmem:[#allocation2 + $0xa8] sm:$0xff] }
 0x177   : > { %941 = vst [vmem:[#allocation2 + $0xd8] sm:$0xff] %v909_v9  ;;  %v783_v10 = vpop.f32.mrf.mxu2 }
 0x178   : > { %v872_v12 = vpop.f32.mrf.mxu3 }
 0x179   : > { %v873_v13 = vadd.f32 %v872_v12, %v783_v10  ;;  %v745_v14 = vpop.f32.mrf.mxu0 }
 0x17a   : > { %v834_v16 = vpop.f32.mrf.mxu1 }
 0x17b   : > { %v925_v17 = vadd.f32 %v873_v13, %v395_v11  ;;  %v835_v18 = vadd.f32 %v834_v16, %v745_v14  ;;  %v386_v11 = vld [vmem:[#allocation2 + $0x88] sm:$0xff] }
 0x17d   : > { %957 = vst [vmem:[#allocation2 + $0x40] sm:$0xff] %v925_v17  ;;  %v910_v19 = vadd.f32 %v835_v18, %v380_v15  ;;  %v402_v17 = vld [vmem:[#allocation2 + $0xd0] sm:$0xff] }
 0x17f   : > { %942 = vst [vmem:[#allocation2 + $0x18] sm:$0xff] %v910_v19  ;;  %v785_v20 = vpop.f32.mrf.mxu2 }
 0x180   : > { %v874_v22 = vpop.f32.mrf.mxu3 }
 0x181   : > { %v875_v23 = vadd.f32 %v874_v22, %v785_v20  ;;  %v748_v24 = vpop.f32.mrf.mxu0 }
 0x182   : > { %v837_v26 = vpop.f32.mrf.mxu1 }
 0x183   : > { %v926_v27 = vadd.f32 %v875_v23, %v396_v21  ;;  %v838_v28 = vadd.f32 %v837_v26, %v748_v24  ;;  %v387_v21 = vld [vmem:[#allocation2 + $0xe8] sm:$0xff] }
 0x185   : > { %958 = vst [vmem:[#allocation2 + $0xc8] sm:$0xff] %v926_v27  ;;  %v911_v29 = vadd.f32 %v838_v28, %v381_v25  ;;  %v403_v27 = vld [vmem:[#allocation2 + $0x10] sm:$0xff] }
 0x187   : > { %943 = vst [vmem:[#allocation2 + $0x50] sm:$0xff] %v911_v29  ;;  %v788_v30 = vpop.f32.mrf.mxu2 }
 0x188   : > { %v877_v32 = vpop.f32.mrf.mxu3 }
 0x189   : > { %v878_v33 = vadd.f32 %v877_v32, %v788_v30  ;;  %v750_v34 = vpop.f32.mrf.mxu0 }
 0x18a   : > { %v839_v36 = vpop.f32.mrf.mxu1 }
 0x18b   : > { %v927_v37 = vadd.f32 %v878_v33, %v397_v31  ;;  %v840_v38 = vadd.f32 %v839_v36, %v750_v34  ;;  %v388_v31 = vld [vmem:[#allocation2 + $0xb8] sm:$0xff] }
 0x18d   : > { %959 = vst [vmem:[#allocation2 + $0xe0] sm:$0xff] %v927_v37  ;;  %v912_v39 = vadd.f32 %v840_v38, %v382_v35  ;;  %v404_v37 = vld [vmem:[#allocation2 + $0x28] sm:$0xff] }
 0x18f   : > { %944 = vst [vmem:[#allocation2 + $0x68] sm:$0xff] %v912_v39  ;;  %v790_v40 = vpop.f32.mrf.mxu2 }
 0x190   : > { %v879_v42 = vpop.f32.mrf.mxu3 }
 0x191   : > { %v880_v43 = vadd.f32 %v879_v42, %v790_v40  ;;  %v753_v44 = vpop.f32.mrf.mxu0 }
 0x192   : > { %v842_v46 = vpop.f32.mrf.mxu1 }
 0x193   : > { %v928_v47 = vadd.f32 %v880_v43, %v398_v41  ;;  %v843_v48 = vadd.f32 %v842_v46, %v753_v44  ;;  %v389_v41 = vld [vmem:[#allocation2 + $0x60] sm:$0xff] }
 0x195   : > { %960 = vst [vmem:[#allocation2 + $0x90] sm:$0xff] %v928_v47  ;;  %v913_v49 = vadd.f32 %v843_v48, %v383_v45  ;;  %v405_v47 = vld [vmem:[#allocation2 + $0xa0] sm:$0xff] }
 0x197   : > { %945 = vst [vmem:[#allocation2 + $0x30] sm:$0xff] %v913_v49  ;;  %v793_v50 = vpop.f32.mrf.mxu2 }
 0x198   : > { %v882_v52 = vpop.f32.mrf.mxu3 }
 0x199   : > { %v883_v53 = vadd.f32 %v882_v52, %v793_v50  ;;  %v755_v54 = vpop.f32.mrf.mxu0 }
 0x19a   : > { %v844_v56 = vpop.f32.mrf.mxu1 }
 0x19b   : > { %v929_v57 = vadd.f32 %v883_v53, %v399_v51  ;;  %v845_v58 = vadd.f32 %v844_v56, %v755_v54  ;;  %v390_v51 = vld [vmem:[#allocation2 + $0xf0] sm:$0xff] }
 0x19d   : > { %961 = vst [vmem:[#allocation2 + $0x70] sm:$0xff] %v929_v57  ;;  %v914_v59 = vadd.f32 %v845_v58, %v384_v55  ;;  %v406_v57 = vld [vmem:[#allocation2 + $0xf8] sm:$0xff] }
 0x19f   : > { %946 = vst [vmem:[#allocation2 + $0x48] sm:$0xff] %v914_v59  ;;  %v795_v60 = vpop.f32.mrf.mxu2 }
 0x1a0   : > { %v884_v62 = vpop.f32.mrf.mxu3 }
 0x1a1   : > { %v885_v63 = vadd.f32 %v884_v62, %v795_v60  ;;  %v758_v0 = vpop.f32.mrf.mxu0 }
 0x1a2   : > { %v847_v2 = vpop.f32.mrf.mxu1 }
 0x1a3   : > { %v930_v3 = vadd.f32 %v885_v63, %v400_v61  ;;  %v848_v4 = vadd.f32 %v847_v2, %v758_v0  ;;  %v391_v61 = vld [vmem:[#allocation2 + $0x8] sm:$0xff] }
 0x1a5   : > { %962 = vst [vmem:[#allocation2 + $0xc0] sm:$0xff] %v930_v3  ;;  %v915_v5 = vadd.f32 %v848_v4, %v385_v1  ;;  %v407_v3 = vld [vmem:[#allocation2 + $0x20] sm:$0xff] }
 0x1a7   : > { %947 = vst [vmem:[#allocation2 + $0x80] sm:$0xff] %v915_v5  ;;  %v798_v6 = vpop.f32.mrf.mxu2 }
 0x1a8   : > { %v887_v8 = vpop.f32.mrf.mxu3 }
 0x1a9   : > { %v888_v9 = vadd.f32 %v887_v8, %v798_v6  ;;  %v760_v10 = vpop.f32.mrf.mxu0 }
 0x1aa   : > { %v849_v12 = vpop.f32.mrf.mxu1 }
 0x1ab   : > { %v931_v13 = vadd.f32 %v888_v9, %v401_v7  ;;  %v850_v14 = vadd.f32 %v849_v12, %v760_v10  ;;  %v392_v7 = vld [vmem:[#allocation2 + $0x78] sm:$0xff] }
 0x1ad   : > { %963 = vst [vmem:[#allocation2 + $0xa8] sm:$0xff] %v931_v13  ;;  %v916_v15 = vadd.f32 %v850_v14, %v386_v11  ;;  %v408_v13 = vld [vmem:[#allocation2 + $0x98] sm:$0xff] }
 0x1af   : > { %948 = vst [vmem:[#allocation2 + $0x88] sm:$0xff] %v916_v15  ;;  %v800_v16 = vpop.f32.mrf.mxu2 }
 0x1b0   : > { %v889_v18 = vpop.f32.mrf.mxu3 }
 0x1b1   : > { %v890_v19 = vadd.f32 %v889_v18, %v800_v16  ;;  %v763_v20 = vpop.f32.mrf.mxu0 }
 0x1b2   : > { %v852_v22 = vpop.f32.mrf.mxu1 }
 0x1b3   : > { %v932_v23 = vadd.f32 %v890_v19, %v402_v17  ;;  %v853_v24 = vadd.f32 %v852_v22, %v763_v20 }
 0x1b5   : > { %964 = vst [vmem:[#allocation2 + $0xd0] sm:$0xff] %v932_v23  ;;  %v917_v25 = vadd.f32 %v853_v24, %v387_v21 }
 0x1b7   : > { %949 = vst [vmem:[#allocation2 + $0xe8] sm:$0xff] %v917_v25  ;;  %v803_v26 = vpop.f32.mrf.mxu2 }
 0x1b8   : > { %v892_v28 = vpop.f32.mrf.mxu3 }
 0x1b9   : > { %v893_v29 = vadd.f32 %v892_v28, %v803_v26  ;;  %v765_v30 = vpop.f32.mrf.mxu0 }
 0x1ba   : > { %v854_v32 = vpop.f32.mrf.mxu1 }
 0x1bb   : > { %v933_v33 = vadd.f32 %v893_v29, %v403_v27  ;;  %v855_v34 = vadd.f32 %v854_v32, %v765_v30 }
 0x1bd   : > { %965 = vst [vmem:[#allocation2 + $0x10] sm:$0xff] %v933_v33  ;;  %v918_v35 = vadd.f32 %v855_v34, %v388_v31 }
 0x1bf   : > { %950 = vst [vmem:[#allocation2 + $0xb8] sm:$0xff] %v918_v35  ;;  %v805_v36 = vpop.f32.mrf.mxu2 }
 0x1c0   : > { %v894_v38 = vpop.f32.mrf.mxu3 }
 0x1c1   : > { %v895_v39 = vadd.f32 %v894_v38, %v805_v36  ;;  %v768_v40 = vpop.f32.mrf.mxu0 }
 0x1c2   : > { %v857_v42 = vpop.f32.mrf.mxu1 }
 0x1c3   : > { %v934_v43 = vadd.f32 %v895_v39, %v404_v37  ;;  %v858_v44 = vadd.f32 %v857_v42, %v768_v40 }
 0x1c5   : > { %966 = vst [vmem:[#allocation2 + $0x28] sm:$0xff] %v934_v43  ;;  %v919_v45 = vadd.f32 %v858_v44, %v389_v41 }
 0x1c7   : > { %951 = vst [vmem:[#allocation2 + $0x60] sm:$0xff] %v919_v45  ;;  %v808_v46 = vpop.f32.mrf.mxu2 }
 0x1c8   : > { %v897_v48 = vpop.f32.mrf.mxu3 }
 0x1c9   : > { %v898_v49 = vadd.f32 %v897_v48, %v808_v46  ;;  %v770_v50 = vpop.f32.mrf.mxu0 }
 0x1ca   : > { %v859_v52 = vpop.f32.mrf.mxu1 }
 0x1cb   : > { %v935_v53 = vadd.f32 %v898_v49, %v405_v47  ;;  %v860_v54 = vadd.f32 %v859_v52, %v770_v50 }
 0x1cd   : > { %967 = vst [vmem:[#allocation2 + $0xa0] sm:$0xff] %v935_v53  ;;  %v920_v55 = vadd.f32 %v860_v54, %v390_v51 }
 0x1cf   : > { %952 = vst [vmem:[#allocation2 + $0xf0] sm:$0xff] %v920_v55  ;;  %v810_v56 = vpop.f32.mrf.mxu2 }
 0x1d0   : > { %v899_v58 = vpop.f32.mrf.mxu3 }
 0x1d1   : > { %v900_v59 = vadd.f32 %v899_v58, %v810_v56  ;;  %v773_v60 = vpop.f32.mrf.mxu0 }
 0x1d2   : > { %v862_v62 = vpop.f32.mrf.mxu1 }
 0x1d3   : > { %v936_v63 = vadd.f32 %v900_v59, %v406_v57  ;;  %v863_v0 = vadd.f32 %v862_v62, %v773_v60 }
 0x1d5   : > { %968 = vst [vmem:[#allocation2 + $0xf8] sm:$0xff] %v936_v63  ;;  %v921_v1 = vadd.f32 %v863_v0, %v391_v61 }
 0x1d7   : > { %953 = vst [vmem:[#allocation2 + $0x8] sm:$0xff] %v921_v1  ;;  %v813_v2 = vpop.f32.mrf.mxu2 }
 0x1d8   : > { %v902_v4 = vpop.f32.mrf.mxu3 }
 0x1d9   : > { %v903_v5 = vadd.f32 %v902_v4, %v813_v2  ;;  %v775_v6 = vpop.f32.mrf.mxu0 }
 0x1da   : > { %v864_v8 = vpop.f32.mrf.mxu1 }
 0x1db   : > { %v937_v9 = vadd.f32 %v903_v5, %v407_v3  ;;  %v865_v10 = vadd.f32 %v864_v8, %v775_v6 }
 0x1dd   : > { %969 = vst [vmem:[#allocation2 + $0x20] sm:$0xff] %v937_v9  ;;  %v922_v11 = vadd.f32 %v865_v10, %v392_v7 }
 0x1df   : > { %954 = vst [vmem:[#allocation2 + $0x78] sm:$0xff] %v922_v11  ;;  %v815_v12 = vpop.f32.mrf.mxu2 }
 0x1e0   : > { %v904_v14 = vpop.f32.mrf.mxu3 }
 0x1e1   : > { %v905_v15 = vadd.f32 %v904_v14, %v815_v12 }
 0x1e3   : > { %v938_v16 = vadd.f32 %v905_v15, %v408_v13 }
 0x1e5   : > { %970 = vst [vmem:[#allocation2 + $0x98] sm:$0xff] %v938_v16 }
 0x1e6 PF: > { %s2909_s21 = sld [smem:[#allocation25_spill]] }
 0x1ec   : > { %p1661_p12 = scmp.ne.s32.totalorder %s2909_s21, 1 }
 0x1ed   : > { %s2910_s25 = sld [smem:[#allocation35_spill]] (!%p1661_p12) }
 0x1ee   : > { %974 = sbr.rel (%p1661_p12) target bundleno = 724 (0x2d4), region = 60 }
 0x1f3   : > { %v1756_v17 = vld [vmem:[#allocation11 + $0x38] sm:$0xff]  ;;  %v1755_v18 = vld [vmem:[#allocation11 + $0x30] sm:$0xff]  ;;  %v1754_v19 = vld [vmem:[#allocation11 + $0x28] sm:$0xff] }
 0x1f4   : > { %1155 = vmatpush.bf16.msra.mxu0 %v1756_v17  ;;  %1869 = vmatpush.bf16.msra.mxu1 %v1756_v17  ;;  %v1753_v20 = vld [vmem:[#allocation11 + $0x20] sm:$0xff]  ;;  %v1752_v21 = vld [vmem:[#allocation11 + $0x18] sm:$0xff]  ;;  %v1751_v23 = vld [vmem:[#allocation11 + $0x10] sm:$0xff] }
 0x1f5   : > { %1870 = vmatpush.bf16.msra.mxu2 %v1756_v17  ;;  %1871 = vmatpush.bf16.msra.mxu3 %v1756_v17  ;;  %v2728_v22 = vld [vmem:[%s2910_s25] ss:$0 sm:$0xff]  ;;  %v975_v24 = vld [vmem:[#allocation2 + $0xb0] sm:$0xff]  ;;  %v984_v27 = vld [vmem:[#allocation2 + $0x88] sm:$0xff] }
 0x1f6   : > { %v976_v25 = vld [vmem:[#allocation2] sm:$0xff]  ;;  %v991_v28 = vld [vmem:[#allocation2 + $0x38] sm:$0xff]  ;;  %v999_v30 = vld [vmem:[#allocation2 + $0xa8] sm:$0xff]  ;;  %v1011_v32 = vadd.f32 %v2728_v22, %v975_v24  ;;  %v1020_v35 = vadd.f32 %v2728_v22, %v984_v27 }
 0x1f7   : > { %v983_v26 = vld [vmem:[#allocation2 + $0x80] sm:$0xff]  ;;  %v992_v29 = vld [vmem:[#allocation2 + $0x58] sm:$0xff]  ;;  %v1000_v31 = vld [vmem:[#allocation2 + $0xd0] sm:$0xff]  ;;  %v1012_v33 = vadd.f32 %v2728_v22, %v976_v25  ;;  %v1027_v36 = vadd.f32 %v2728_v22, %v991_v28  ;;  %v1035_v39 = vadd.f32 %v2728_v22, %v999_v30 }
 0x1f8   : > { %1156 = vmatpush.bf16.msra.mxu0 %v1755_v18  ;;  %1872 = vmatpush.bf16.msra.mxu1 %v1755_v18  ;;  %v1019_v34 = vadd.f32 %v2728_v22, %v983_v26  ;;  %v1750_v37 = vld [vmem:[#allocation11 + $0x8] sm:$0xff]  ;;  %v1028_v38 = vadd.f32 %v2728_v22, %v992_v29  ;;  %v1036_v40 = vadd.f32 %v2728_v22, %v1000_v31  ;;  %v1043_v41 = vmax.f32 %v1011_v32, 0.0  ;;  %v1749_v45 = vld [vmem:[#allocation11] sm:$0xff]  ;;  %v977_v54 = vld [vmem:[#allocation2 + $0xd8] sm:$0xff] }
 0x1f9   : > { %1873 = vmatpush.bf16.msra.mxu2 %v1755_v18  ;;  %1874 = vmatpush.bf16.msra.mxu3 %v1755_v18  ;;  %v1044_v42 = vmax.f32 %v1012_v33, 0.0  ;;  %v1052_v44 = vmax.f32 %v1020_v35, 0.0  ;;  %v1059_v46 = vmax.f32 %v1027_v36, 0.0  ;;  %v1067_v48 = vmax.f32 %v1035_v39, 0.0  ;;  %v978_v55 = vld [vmem:[#allocation2 + $0x18] sm:$0xff]  ;;  %v985_v56 = vld [vmem:[#allocation2 + $0xe8] sm:$0xff] }
 0x1fa   : > { %v1051_v43 = vmax.f32 %v1019_v34, 0.0  ;;  %v1060_v47 = vmax.f32 %v1028_v38, 0.0  ;;  %v1068_v49 = vmax.f32 %v1036_v40, 0.0  ;;  %v986_v57 = vld [vmem:[#allocation2 + $0xb8] sm:$0xff]  ;;  %v993_v58 = vld [vmem:[#allocation2 + $0x40] sm:$0xff]  ;;  %v994_v59 = vld [vmem:[#allocation2 + $0xc8] sm:$0xff]  ;;  %v1013_v62 = vadd.f32 %v2728_v22, %v977_v54 }
 0x1fb   : > { %v1075_v50 = vpack.c.bf16 %v1044_v42, %v1043_v41  ;;  %v1001_v60 = vld [vmem:[#allocation2 + $0x10] sm:$0xff]  ;;  %v1002_v61 = vld [vmem:[#allocation2 + $0x28] sm:$0xff]  ;;  %v1014_v63 = vadd.f32 %v2728_v22, %v978_v55  ;;  %v1021_v0 = vadd.f32 %v2728_v22, %v985_v56  ;;  %v1022_v1 = vadd.f32 %v2728_v22, %v986_v57  ;;  %v1003_v25 = vld [vmem:[#allocation2 + $0xa0] sm:$0xff] }
 0x1fc   : > { %1157 = vmatpush.bf16.msra.mxu0 %v1754_v19  ;;  %1875 = vmatpush.bf16.msra.mxu1 %v1754_v19  ;;  %v1079_v51 = vpack.c.bf16 %v1052_v44, %v1051_v43  ;;  %v1083_v52 = vpack.c.bf16 %v1060_v47, %v1059_v46  ;;  %v1087_v53 = vpack.c.bf16 %v1068_v49, %v1067_v48  ;;  %v1045_v6 = vmax.f32 %v1013_v62, 0.0  ;;  %v979_v18 = vld [vmem:[#allocation2 + $0x50] sm:$0xff]  ;;  %v1004_v26 = vld [vmem:[#allocation2 + $0xf8] sm:$0xff]  ;;  %v982_v48 = vld [vmem:[#allocation2 + $0x48] sm:$0xff] }
 0x1fd   : > { %1876 = vmatpush.bf16.msra.mxu2 %v1754_v19  ;;  %1877 = vmatpush.bf16.msra.mxu3 %v1754_v19  ;;  %v1029_v2 = vadd.f32 %v2728_v22, %v993_v58  ;;  %v1030_v3 = vadd.f32 %v2728_v22, %v994_v59  ;;  %v1037_v4 = vadd.f32 %v2728_v22, %v1001_v60  ;;  %v1046_v7 = vmax.f32 %v1014_v63, 0.0  ;;  %v980_v19 = vld [vmem:[#allocation2 + $0x68] sm:$0xff]  ;;  %v996_v24 = vld [vmem:[#allocation2 + $0x90] sm:$0xff]  ;;  %v1006_v54 = vld [vmem:[#allocation2 + $0x98] sm:$0xff] }
 0x1fe   : > { %v1038_v5 = vadd.f32 %v2728_v22, %v1002_v61  ;;  %v1053_v8 = vmax.f32 %v1021_v0, 0.0  ;;  %v1054_v9 = vmax.f32 %v1022_v1, 0.0  ;;  %v1015_v27 = vadd.f32 %v2728_v22, %v979_v18  ;;  %v981_v47 = vld [vmem:[#allocation2 + $0x30] sm:$0xff]  ;;  %v989_v49 = vld [vmem:[#allocation2 + $0x8] sm:$0xff] }
 0x1ff   : > { %v1061_v10 = vmax.f32 %v1029_v2, 0.0  ;;  %v1062_v11 = vmax.f32 %v1030_v3, 0.0  ;;  %v1069_v12 = vmax.f32 %v1037_v4, 0.0  ;;  %v1076_v14 = vpack.c.bf16 %v1046_v7, %v1045_v6 }
 0x200   : > { %1158 = vmatpush.bf16.msra.mxu0 %v1753_v20  ;;  %1878 = vmatpush.bf16.msra.mxu1 %v1753_v20  ;;  %v1070_v13 = vmax.f32 %v1038_v5, 0.0  ;;  %v1080_v15 = vpack.c.bf16 %v1054_v9, %v1053_v8  ;;  %v1016_v28 = vadd.f32 %v2728_v22, %v980_v19  ;;  %v1032_v32 = vadd.f32 %v2728_v22, %v996_v24 }
 0x201   : > { %1879 = vmatpush.bf16.msra.mxu2 %v1753_v20  ;;  %1880 = vmatpush.bf16.msra.mxu3 %v1753_v20  ;;  %v1084_v16 = vpack.c.bf16 %v1062_v11, %v1061_v10  ;;  %v987_v20 = vld [vmem:[#allocation2 + $0x60] sm:$0xff]  ;;  %v1039_v33 = vadd.f32 %v2728_v22, %v1003_v25  ;;  %v1040_v34 = vadd.f32 %v2728_v22, %v1004_v26  ;;  %v1047_v35 = vmax.f32 %v1015_v27, 0.0 }
 0x202   : > { %v1088_v17 = vpack.c.bf16 %v1070_v13, %v1069_v12  ;;  %v1023_v29 = vadd.f32 %v2728_v22, %v987_v20  ;;  %v1048_v36 = vmax.f32 %v1016_v28, 0.0  ;;  %v1064_v40 = vmax.f32 %v1032_v32, 0.0 }
 0x203   : > { %v1071_v41 = vmax.f32 %v1039_v33, 0.0  ;;  %v1072_v42 = vmax.f32 %v1040_v34, 0.0  ;;  %v1017_v55 = vadd.f32 %v2728_v22, %v981_v47  ;;  %v1018_v56 = vadd.f32 %v2728_v22, %v982_v48 }
 0x204   : > { %1159 = vmatpush.bf16.msra.mxu0 %v1752_v21  ;;  %1881 = vmatpush.bf16.msra.mxu1 %v1752_v21  ;;  %v1077_v43 = vpack.c.bf16 %v1048_v36, %v1047_v35  ;;  %v1025_v57 = vadd.f32 %v2728_v22, %v989_v49  ;;  %v1042_v62 = vadd.f32 %v2728_v22, %v1006_v54 }
 0x205   : > { %1882 = vmatpush.bf16.msra.mxu2 %v1752_v21  ;;  %1883 = vmatpush.bf16.msra.mxu3 %v1752_v21  ;;  %v988_v21 = vld [vmem:[#allocation2 + $0xf0] sm:$0xff]  ;;  %v1089_v46 = vpack.c.bf16 %v1072_v42, %v1071_v41  ;;  %v1049_v63 = vmax.f32 %v1017_v55, 0.0  ;;  %v1050_v0 = vmax.f32 %v1018_v56, 0.0 }
 0x206   : > { %v1024_v30 = vadd.f32 %v2728_v22, %v988_v21  ;;  %v1057_v1 = vmax.f32 %v1025_v57, 0.0  ;;  %v1074_v6 = vmax.f32 %v1042_v62, 0.0 }
 0x207   : > { %v1078_v7 = vpack.c.bf16 %v1050_v0, %v1049_v63 }
 0x208   : > { %1160 = vmatpush.bf16.msra.mxu0 %v1751_v23  ;;  %1884 = vmatpush.bf16.msra.mxu1 %v1751_v23  ;;  %v1056_v38 = vmax.f32 %v1024_v30, 0.0 }
 0x209   : > { %1885 = vmatpush.bf16.msra.mxu2 %v1751_v23  ;;  %1886 = vmatpush.bf16.msra.mxu3 %v1751_v23  ;;  %v995_v23 = vld [vmem:[#allocation2 + $0xe0] sm:$0xff] }
 0x20a   : > { %v1031_v31 = vadd.f32 %v2728_v22, %v995_v23 }
 0x20c   : > { %1161 = vmatpush.bf16.msra.mxu0 %v1750_v37  ;;  %1887 = vmatpush.bf16.msra.mxu1 %v1750_v37  ;;  %v1063_v39 = vmax.f32 %v1031_v31, 0.0 }
 0x20d   : > { %1888 = vmatpush.bf16.msra.mxu2 %v1750_v37  ;;  %1889 = vmatpush.bf16.msra.mxu3 %v1750_v37  ;;  %v1055_v37 = vmax.f32 %v1023_v29, 0.0 }
 0x20f   : > { %v1081_v44 = vpack.c.bf16 %v1056_v38, %v1055_v37 }
 0x210   : > { %1162 = vmatpush.bf16.msra.mxu0 %v1749_v45  ;;  %1890 = vmatpush.bf16.msra.mxu1 %v1749_v45 }
 0x211   : > { %1891 = vmatpush.bf16.msra.mxu2 %v1749_v45  ;;  %1892 = vmatpush.bf16.msra.mxu3 %v1749_v45  ;;  %v1085_v45 = vpack.c.bf16 %v1064_v40, %v1063_v39 }
 0x213   : > { %1163 = vmatmul.bf16.vlgmr.msra.gmra.mxu0 %v1075_v50  ;;  %1183 = vmatmul.bf16.vlgmr.msra.gmra.mxu1 %v1079_v51  ;;  %v990_v50 = vld [vmem:[#allocation2 + $0x78] sm:$0xff]  ;;  %v997_v51 = vld [vmem:[#allocation2 + $0x70] sm:$0xff] }
 0x214   : > { %1203 = vmatmul.bf16.vlgmr.msra.gmra.mxu2 %v1083_v52  ;;  %1223 = vmatmul.bf16.vlgmr.msra.gmra.mxu3 %v1087_v53  ;;  %v998_v52 = vld [vmem:[#allocation2 + $0xc0] sm:$0xff]  ;;  %v1026_v58 = vadd.f32 %v2728_v22, %v990_v50  ;;  %v1033_v59 = vadd.f32 %v2728_v22, %v997_v51 }
 0x215   : > { %v1005_v53 = vld [vmem:[#allocation2 + $0x20] sm:$0xff]  ;;  %v1034_v60 = vadd.f32 %v2728_v22, %v998_v52 }
 0x216   : > { %v1041_v61 = vadd.f32 %v2728_v22, %v1005_v53  ;;  %v1058_v2 = vmax.f32 %v1026_v58, 0.0  ;;  %v1065_v3 = vmax.f32 %v1033_v59, 0.0 }
 0x217   : > { %v1066_v4 = vmax.f32 %v1034_v60, 0.0 }
 0x218   : > { %v1073_v5 = vmax.f32 %v1041_v61, 0.0  ;;  %v1082_v8 = vpack.c.bf16 %v1058_v2, %v1057_v1 }
 0x219   : > { %v1086_v9 = vpack.c.bf16 %v1066_v4, %v1065_v3 }
 0x21a   : > { %v1090_v10 = vpack.c.bf16 %v1074_v6, %v1073_v5 }
 0x223   : > { %1168 = vmatmul.bf16.gmra.mxu0 %v1076_v14  ;;  %1188 = vmatmul.bf16.gmra.mxu1 %v1080_v15 }
 0x224   : > { %1208 = vmatmul.bf16.gmra.mxu2 %v1084_v16  ;;  %1228 = vmatmul.bf16.gmra.mxu3 %v1088_v17 }
 0x233   : > { %1173 = vmatmul.bf16.gmra.mxu0 %v1077_v43  ;;  %1193 = vmatmul.bf16.gmra.mxu1 %v1081_v44 }
 0x234   : > { %1213 = vmatmul.bf16.gmra.mxu2 %v1085_v45  ;;  %1233 = vmatmul.bf16.gmra.mxu3 %v1089_v46 }
 0x243   : > { %1178 = vmatmul.bf16.gmra.mxu0 %v1078_v7  ;;  %1198 = vmatmul.bf16.gmra.mxu1 %v1082_v8 }
 0x244   : > { %1218 = vmatmul.bf16.gmra.mxu2 %v1086_v9  ;;  %1238 = vmatmul.bf16.gmra.mxu3 %v1090_v10 }
 0x290   : > { %v1164_v11 = vpop.f32.mrf.mxu0  ;;  %v1184_v22 = vpop.f32.mrf.mxu1 }
 0x297   : > { %v1204_v12 = vpop.f32.mrf.mxu2  ;;  %v1224_v13 = vpop.f32.mrf.mxu3 }
 0x298   : > { %v1166_v14 = vpop.f32.mrf.mxu0  ;;  %v1186_v15 = vpop.f32.mrf.mxu1 }
 0x299   : > { %v1761_v16 = vpack.c.bf16 %v1166_v14, %v1164_v11  ;;  %v1781_v17 = vpack.c.bf16 %v1186_v15, %v1184_v22 }
 0x29b   : > { %1762 = vst [vmem:[%s2639_s29] sm:$0xff] %v1761_v16  }
 0x29c   : > { %1841 = vst [vmem:[%s2639_s29 + $0x20] sm:$0xff] %v1781_v17  }
 0x29f   : > { %v1206_v18 = vpop.f32.mrf.mxu2  ;;  %v1226_v19 = vpop.f32.mrf.mxu3 }
 0x2a0   : > { %v1801_v20 = vpack.c.bf16 %v1206_v18, %v1204_v12  ;;  %v1821_v21 = vpack.c.bf16 %v1226_v19, %v1224_v13  ;;  %v1169_v23 = vpop.f32.mrf.mxu0  ;;  %v1189_v24 = vpop.f32.mrf.mxu1 }
 0x2a2   : > { %1845 = vst [vmem:[%s2639_s29 + $0x40] sm:$0xff] %v1801_v20  }
 0x2a3   : > { %1849 = vst [vmem:[%s2639_s29 + $0x60] sm:$0xff] %v1821_v21  }
 0x2a7   : > { %v1209_v25 = vpop.f32.mrf.mxu2  ;;  %v1229_v26 = vpop.f32.mrf.mxu3 }
 0x2a8   : > { %v1171_v27 = vpop.f32.mrf.mxu0  ;;  %v1191_v28 = vpop.f32.mrf.mxu1 }
 0x2a9   : > { %v1766_v29 = vpack.c.bf16 %v1171_v27, %v1169_v23  ;;  %v1786_v30 = vpack.c.bf16 %v1191_v28, %v1189_v24 }
 0x2ab   : > { %1838 = vst [vmem:[%s2639_s29 + $0x8] sm:$0xff] %v1766_v29  }
 0x2ac   : > { %1842 = vst [vmem:[%s2639_s29 + $0x28] sm:$0xff] %v1786_v30  }
 0x2af   : > { %v1211_v31 = vpop.f32.mrf.mxu2  ;;  %v1231_v32 = vpop.f32.mrf.mxu3 }
 0x2b0   : > { %v1806_v33 = vpack.c.bf16 %v1211_v31, %v1209_v25  ;;  %v1826_v34 = vpack.c.bf16 %v1231_v32, %v1229_v26  ;;  %v1174_v35 = vpop.f32.mrf.mxu0  ;;  %v1194_v36 = vpop.f32.mrf.mxu1 }
 0x2b2   : > { %1846 = vst [vmem:[%s2639_s29 + $0x48] sm:$0xff] %v1806_v33  }
 0x2b3   : > { %1850 = vst [vmem:[%s2639_s29 + $0x68] sm:$0xff] %v1826_v34  }
 0x2b7   : > { %v1214_v37 = vpop.f32.mrf.mxu2  ;;  %v1234_v38 = vpop.f32.mrf.mxu3 }
 0x2b8   : > { %v1176_v39 = vpop.f32.mrf.mxu0  ;;  %v1196_v40 = vpop.f32.mrf.mxu1 }
 0x2b9   : > { %v1771_v41 = vpack.c.bf16 %v1176_v39, %v1174_v35  ;;  %v1791_v42 = vpack.c.bf16 %v1196_v40, %v1194_v36 }
 0x2bb   : > { %1839 = vst [vmem:[%s2639_s29 + $0x10] sm:$0xff] %v1771_v41  }
 0x2bc   : > { %1843 = vst [vmem:[%s2639_s29 + $0x30] sm:$0xff] %v1791_v42  }
 0x2bf   : > { %v1216_v43 = vpop.f32.mrf.mxu2  ;;  %v1236_v44 = vpop.f32.mrf.mxu3 }
 0x2c0   : > { %v1811_v45 = vpack.c.bf16 %v1216_v43, %v1214_v37  ;;  %v1831_v46 = vpack.c.bf16 %v1236_v44, %v1234_v38  ;;  %v1179_v47 = vpop.f32.mrf.mxu0  ;;  %v1199_v48 = vpop.f32.mrf.mxu1 }
 0x2c2   : > { %1847 = vst [vmem:[%s2639_s29 + $0x50] sm:$0xff] %v1811_v45  }
 0x2c3   : > { %1851 = vst [vmem:[%s2639_s29 + $0x70] sm:$0xff] %v1831_v46  }
 0x2c7   : > { %v1219_v49 = vpop.f32.mrf.mxu2  ;;  %v1239_v50 = vpop.f32.mrf.mxu3 }
 0x2c8   : > { %v1181_v51 = vpop.f32.mrf.mxu0  ;;  %v1201_v52 = vpop.f32.mrf.mxu1 }
 0x2c9   : > { %v1776_v53 = vpack.c.bf16 %v1181_v51, %v1179_v47  ;;  %v1796_v54 = vpack.c.bf16 %v1201_v52, %v1199_v48 }
 0x2cb   : > { %1840 = vst [vmem:[%s2639_s29 + $0x18] sm:$0xff] %v1776_v53  }
 0x2cc   : > { %1844 = vst [vmem:[%s2639_s29 + $0x38] sm:$0xff] %v1796_v54  }
 0x2cf   : > { %v1221_v55 = vpop.f32.mrf.mxu2  ;;  %v1241_v56 = vpop.f32.mrf.mxu3 }
 0x2d0   : > { %v1816_v57 = vpack.c.bf16 %v1221_v55, %v1219_v49  ;;  %v1836_v58 = vpack.c.bf16 %v1241_v56, %v1239_v50 }
 0x2d2   : > { %1848 = vst [vmem:[%s2639_s29 + $0x58] sm:$0xff] %v1816_v57  }
 0x2d3   : > { %1852 = vst [vmem:[%s2639_s29 + $0x78] sm:$0xff] %v1836_v58  }
 0x2d4 PF: > { %s2911_s0 = sld [smem:[#allocation26_spill]]  ;;  %s1321_s23 = sshll.u32 %s2639_s29, 4  ;;  %s1322_s23 = int_to_ptr.vmem [resolvable:$true] %s1321_s23 }
 0x2d5   : > { %s2914_s18 = sld [smem:[#allocation37_spill]]  ;;  %s1309_s15 = scalar_lea.sflag [#allocation8], %s323_s22 }
 0x2da   : > { %s1757_s6 = sshll.u32 %s2911_s0, 7 }
 0x2db   : > { %s1320_s1 = scalar_lea.hbm %s2914_s18, %s1757_s6  ;;  %s2188_s20 = scalar_lea.hbm %s2914_s18, 256 }
 0x2dc   : > { %s1323_s26 = sshll.u32 %s1320_s1, 4  ;;  %s1324_s26 = int_to_ptr.hbm [resolvable:$true] %s1323_s26 }
 0x2dd   : > { %s2182_s19 = sshra.s32 %s1324_s26, 4  ;;  %s2183_s19 = int_to_ptr.hbm [resolvable:$true] %s2182_s19 }
 0x2de   : > { %s2184_s4 = scalar_lea.hbm %s2183_s19, 128  ;;  %p2189_p6 = scmp.lt.s32.totalorder %s2183_s19, %s2914_s18 }
 0x2df   : > { %p2185_p2 = scmp.ne.s32.totalorder %s2183_s19, %s2184_s4  ;;  %p2190_p8 = scmp.lt.s32.totalorder %s2188_s20, %s2184_s4 }
 0x2e1   : > { %p2186_p10 = pnand %p2185_p2, %p2468_p9  ;;  %p2191_p7 = por %p2190_p8, %p2189_p6 }
 0x2e3   : > { %p2187_p4 = pneg %p2186_p10 }
 0x2e5   : > { %p2192_p1 = pnand %p2191_p7, %p2187_p4 }
 0x2e7   : > { %2195 = shalt.err (!%p2192_p1)
}
 0x2e8   : > { %s2335_s22 = smov 64   ;;  %s2336_s29 = smov 4  }
 0x2e9   : > { %1905 = dma.vmem_to_hbm [thread:$0]  (%p2468_p9), %s1322_s23, 2048, %s1324_s26, %s1309_s15, %s2335_s22, %s2335_s22, %s2336_s29  }
 0x2ea PF: > { %s2915_s24 = sld [smem:[#allocation22_spill]]  ;;  %p1929_p11 = scmp.ge.s32.totalorder %s2324_s16, 2 }
 0x2eb   : > { %s2916_s30 = sld [smem:[#allocation30_spill]] }
 0x2f0   : > { %s1338_s25 = sand.u32 1, %s2915_s24  }
 0x2f1   : > { %p2917_p13 = scmp.ne.s32.totalorder %s2916_s30, 0  ;;  %s1339_s0 = scalar_lea.sflag [#allocation8], %s1338_s25 }
 0x2f3   : > { %p1923_p0 = pnand %p1929_p11, %p2917_p13 }
 0x2f5   : > { %p1924_p3 = pneg %p1923_p0 }
 0x2f7   : > { %2267 = dma.done.wait (%p1924_p3), %s1339_s0, 2048  }
 0x2f8   : > { %2269 = vsyncadd (%p1924_p3), %s1339_s0, 4294965248  ;;  %s38_s16 = sadd.s32 1, %s2324_s16   ;;  %s2919_s0 = sld [smem:[#allocation23_spill]] }
 0x2f9   : > { %p2800_p5 = scmp.ge.s32.totalorder %s38_s16, 6   ;;  %s2920_s29 = sld [smem:[#allocation24_spill]] }
 0x2fa   : > { %s2921_s1 = sld [smem:[#allocation33_spill]]  ;;  %s2927_s30 = smov %s2288_s7 }
 0x2fb   : > { %s2922_s12 = sld [smem:[#allocation34_spill]]  ;;  %s2928_s7 = smov %s2292_s8 }
 0x2fc   : > { %s2923_s6 = sld [smem:[#allocation27_spill]]  ;;  %s2929_s8 = smov %s2553_s14 }
 0x2fd   : > { %s2924_s13 = sld [smem:[#allocation28_spill]]  ;;  %s2930_s9 = smov %s2300_s10 }
 0x2fe   : > { %s2925_s28 = sld [smem:[#allocation31_spill]]  ;;  %s2931_s10 = smov %s2304_s11 }
 0x2ff   : > { %s2926_s15 = sld [smem:[#allocation32_spill]] }
 0x300   :  { %37 = sbr.rel (!%p2800_p5) target bundleno = 21 (0x15), region = 110 }
 0x301   : > { %s2932_s11 = smov %s2922_s12 }
 0x302   : > { %s2933_s12 = smov %s2923_s6 }
 0x304   : > { %s2934_s14 = smov %s2925_s28 }
 0x305   :  { %1345 = vsyncpa [#allocation7], 1 }
 0x306   :  { %1347 = vsyncpa [#allocation7 + $0x1], 1 }
 0x307   :  { %1348 = vsyncpa [#allocation10], 1 }
 0x308   :  { %1350 = vsyncpa [#allocation10 + $0x1], 1 }
 0x309   :  { %1351 = vsyncpa [#allocation8], 1 }
 0x30a   :  { %1353 = vsyncpa [#allocation8 + $0x1], 1 }

</bundles_post_ra>
